<compile_context>
chip_gen: v5e
topology: v5e:2x2
jax: 0.10.0
libtpu: 0.0.40
codegen_flags: <defaults>
</compile_context>

<pallas_src>
import math

import jax
import jax.numpy as jnp
from jax.experimental import pallas as pl
from jax.experimental.pallas import tpu as pltpu


def make_encoder_block_kernel(B, S, D, Hq, Hkv, hd, HID, eps):
    n_rep = Hq // Hkv
    scale = 1.0 / math.sqrt(hd)
    KVD = Hkv * hd
    # column offsets inside the fused QKV(+rot) projection result
    O_Q, O_QR, O_K, O_KR, O_V = 0, D, 2 * D, 2 * D + KVD, 2 * D + 2 * KVD

    def kernel(x_ref, wqkv_ref, wo_ref, w13_ref, w2_ref,
               cosq_ref, sinq_ref, cosk_ref, sink_ref, out_ref):
        x = x_ref[...]                                    # (B*S, D) f32

        # ---- RMSNorm (attention_norm); gamma is folded into wqkv ----
        ms = jnp.mean(x * x, axis=-1, keepdims=True)
        xn = (x * jax.lax.rsqrt(ms + eps)).astype(jnp.bfloat16)

        # ---- fused QKV + RoPE-branch projection: ONE bf16 MXU push ----
        qkv = jnp.dot(xn, wqkv_ref[...], preferred_element_type=jnp.float32)
        xq = qkv[:, O_Q:O_Q + D]
        xqr = qkv[:, O_QR:O_QR + D]
        xk = qkv[:, O_K:O_K + KVD]
        xkr = qkv[:, O_KR:O_KR + KVD]
        xv = qkv[:, O_V:O_V + KVD]

        # ---- RoPE combine (f32 elementwise on the VPU) ----
        xq = xq * cosq_ref[...] + xqr * sinq_ref[...]     # (B*S, D)
        xk = xk * cosk_ref[...] + xkr * sink_ref[...]     # (B*S, KVD)

        # ---- attention: unroll over (batch, kv head); the n_rep query heads
        #      sharing a kv head are stacked along M ----
        batch_rows = []
        for b in range(B):
            r0 = b * S
            head_outs = []
            for kvh in range(Hkv):
                c0 = kvh * hd
                k_h = xk[r0:r0 + S, c0:c0 + hd].astype(jnp.bfloat16)   # (S,hd)
                v_h = xv[r0:r0 + S, c0:c0 + hd].astype(jnp.bfloat16)   # (S,hd)
                q_stack = jnp.concatenate(
                    [xq[r0:r0 + S,
                        (kvh * n_rep + r) * hd:(kvh * n_rep + r + 1) * hd]
                     for r in range(n_rep)], axis=0).astype(jnp.bfloat16)
                # scores = Q @ K^T (contract last dims; no explicit transpose)
                s = jax.lax.dot_general(
                    q_stack, k_h, (((1,), (1,)), ((), ())),
                    preferred_element_type=jnp.float32) * scale  # (n_rep*S, S)
                # zero KV-cache row at position 0 => extra score column of 0
                # and a zero value row; fold into the softmax.
                m = jnp.maximum(jnp.max(s, axis=-1, keepdims=True), 0.0)
                e = jnp.exp(s - m)
                denom = jnp.sum(e, axis=-1, keepdims=True) + jnp.exp(-m)
                p = (e * pl.reciprocal(denom, approx=True)).astype(jnp.bfloat16)
                o = jnp.dot(p, v_h,
                            preferred_element_type=jnp.float32)  # (n_rep*S, hd)
                for r in range(n_rep):
                    head_outs.append(o[r * S:(r + 1) * S, :])
            batch_rows.append(jnp.concatenate(head_outs, axis=-1))   # (S, D)
        attn = jnp.concatenate(batch_rows, axis=0)                   # (B*S, D)

        attn_out = jnp.dot(attn.astype(jnp.bfloat16), wo_ref[...],
                           preferred_element_type=jnp.float32)
        h = x + attn_out                                             # residual 1

        # ---- RMSNorm (ffn_norm); gamma folded into w13 ----
        ms2 = jnp.mean(h * h, axis=-1, keepdims=True)
        hn = (h * jax.lax.rsqrt(ms2 + eps)).astype(jnp.bfloat16)

        # ---- SwiGLU FFN: fused w1|w3 matmul (lane-dense N = 2*HID) ----
        a_g = jnp.dot(hn, w13_ref[...], preferred_element_type=jnp.float32)
        a = a_g[:, :HID]
        g = a_g[:, HID:]
        swish = a * jax.nn.sigmoid(a)
        ff = jnp.dot((swish * g).astype(jnp.bfloat16), w2_ref[...],
                     preferred_element_type=jnp.float32)

        out_ref[...] = h + ff                                        # residual 2

    return kernel


def _rope_tables(S, n_heads, head_dim, cache_idx, theta=10000.0):
    """cos / signed-sin tables, (S, n_heads*head_dim), positions
    [cache_idx : cache_idx + S], matching apply_rotary_embeddings."""
    half = head_dim // 2
    freqs = 1.0 / (theta ** (jnp.arange(0, head_dim, 2, dtype=jnp.float32) / head_dim))
    pos = jnp.arange(cache_idx, cache_idx + S, dtype=jnp.float32)
    ang = jnp.outer(pos, freqs)                              # (S, half)
    cos = jnp.repeat(jnp.cos(ang), 2, axis=-1)               # (S, head_dim)
    sin = jnp.repeat(jnp.sin(ang), 2, axis=-1)
    sign = jnp.tile(jnp.array([-1.0, 1.0], jnp.float32), half)
    sin = sin * sign                                          # signed sin
    cos_full = jnp.tile(cos, (1, n_heads))                    # (S, n_heads*head_dim)
    sin_full = jnp.tile(sin, (1, n_heads))
    return cos_full, sin_full


def _swap_perm(width):
    idx = jnp.arange(width)
    return jnp.eye(width, dtype=jnp.float32)[idx ^ 1]         # (x @ P)[j] = x[j^1]


def encoder_block_forward(x, params):
    """x: (B, S, D) float32. params: dict of pre-transposed f32 weights."""
    B, S, D = x.shape
    Hq, Hkv, hd, HID, eps = (params["n_heads"], params["n_kv_heads"],
                             params["head_dim"], params["hidden_dim"],
                             params["eps"])
    KVD = Hkv * hd
    cache_idx = 1  # fresh selfAttention module

    # RoPE tables, tiled over the folded batch dimension.
    cos_q, sin_q = _rope_tables(S, Hq, hd, cache_idx)
    cos_k, sin_k = _rope_tables(S, Hkv, hd, cache_idx)
    cos_q, sin_q = jnp.tile(cos_q, (B, 1)), jnp.tile(sin_q, (B, 1))
    cos_k, sin_k = jnp.tile(cos_k, (B, 1)), jnp.tile(sin_k, (B, 1))

    # Host-side weight prep: fold RMSNorm gammas and the RoPE swap-permutation
    # into the projection weights, fuse the projections column-wise, then cast
    # to bf16 for the MXU.
    Pq, Pk = _swap_perm(D), _swap_perm(KVD)
    g_attn = params["attn_norm_w"].reshape(D)
    g_ffn = params["ffn_norm_w"].reshape(D)
    wq_eff = g_attn[:, None] * params["wq_t"]
    wk_eff = g_attn[:, None] * params["wk_t"]
    wv_eff = g_attn[:, None] * params["wv_t"]
    wq_rot = wq_eff @ Pq
    wk_rot = wk_eff @ Pk
    w1_eff = g_ffn[:, None] * params["w1_t"]
    w3_eff = g_ffn[:, None] * params["w3_t"]

    bf = lambda a: a.astype(jnp.bfloat16)
    wqkv = bf(jnp.concatenate([wq_eff, wq_rot, wk_eff, wk_rot, wv_eff], axis=1))
    w13 = bf(jnp.concatenate([w1_eff, w3_eff], axis=1))
    x2d = x.reshape(B * S, D)

    operands = (x2d, wqkv, bf(params["wo_t"]), w13, bf(params["w2_t"]),
                cos_q, sin_q, cos_k, sin_k)

    kernel = make_encoder_block_kernel(B, S, D, Hq, Hkv, hd, HID, eps)

    def full_spec(a):
        shp = a.shape
        return pl.BlockSpec(shp, lambda *_: (0,) * len(shp))

    grid_spec = pltpu.PrefetchScalarGridSpec(
        num_scalar_prefetch=0,
        grid=(1,),                       # batch folded into the M dimension
        in_specs=[full_spec(a) for a in operands],
        out_specs=pl.BlockSpec((B * S, D), lambda i: (0, 0)),
    )

    out2d = pl.pallas_call(
        kernel,
        out_shape=jax.ShapeDtypeStruct((B * S, D), jnp.float32),
        grid_spec=grid_spec,
        compiler_params=pltpu.CompilerParams(
            dimension_semantics=("arbitrary",)),
    )(*operands)
    return out2d.reshape(B, S, D)


def encoder_block_reference(x, params):
    """Plain-JAX f32 reference mirroring the PyTorch forward (cache_idx == 1)."""
    B, S, D = x.shape
    Hq, Hkv, hd, eps = (params["n_heads"], params["n_kv_heads"],
                        params["head_dim"], params["eps"])
    n_rep = Hq // Hkv

    def rmsnorm(v, w):
        return w * (v * jax.lax.rsqrt(jnp.mean(v * v, -1, keepdims=True) + eps))

    def rope(v, n_heads, cache_idx):
        cos, sin = _rope_tables(S, n_heads, hd, cache_idx)
        P = _swap_perm(n_heads * hd)
        return v * cos + (v @ P) * sin

    xn = rmsnorm(x, params["attn_norm_w"][0])
    xq = rope(xn @ params["wq_t"], Hq, 1)                      # (B,S,D)
    xk = rope(xn @ params["wk_t"], Hkv, 1)                     # (B,S,KVD)
    xv = xn @ params["wv_t"]
    xqh = xq.reshape(B, S, Hq, hd)
    xkh = jnp.repeat(xk.reshape(B, S, Hkv, hd), n_rep, axis=2)
    xvh = jnp.repeat(xv.reshape(B, S, Hkv, hd), n_rep, axis=2)
    # prepend the all-zero KV-cache row at position 0
    zeros = jnp.zeros((B, 1, Hq, hd), jnp.float32)
    keys = jnp.concatenate([zeros, xkh], axis=1)
    vals = jnp.concatenate([zeros, xvh], axis=1)
    s = jnp.einsum("bqhd,bkhd->bhqk", xqh, keys) / math.sqrt(hd)
    p = jax.nn.softmax(s, axis=-1)
    o = jnp.einsum("bhqk,bkhd->bqhd", p, vals).reshape(B, S, D)
    h = x + o @ params["wo_t"]
    hn = rmsnorm(h, params["ffn_norm_w"][0])
    a = hn @ params["w1_t"]
    ff = (a * jax.nn.sigmoid(a) * (hn @ params["w3_t"])) @ params["w2_t"]
    return h + ff


if __name__ == "__main__":
    # Small ModelArgs-consistent configuration.
    B, S = 2, 8
    dim, n_heads, n_kv_heads = 64, 4, 2
    multiple_of, eps = 32, 1e-6
    head_dim = dim // n_heads
    kvd = n_kv_heads * head_dim
    hidden = dim * 4
    hidden = int(2 * hidden / 3)
    hidden = multiple_of * ((hidden + multiple_of - 1) // multiple_of)  # 192

    key = jax.random.PRNGKey(0)
    ks = jax.random.split(key, 9)
    x = jax.random.normal(ks[0], (B, S, dim), jnp.float32)

    def w(k, shape, scale=0.05):
        return scale * jax.random.normal(k, shape, jnp.float32)

    params = dict(
        n_heads=n_heads, n_kv_heads=n_kv_heads, head_dim=head_dim,
        hidden_dim=hidden, eps=eps,
        attn_norm_w=jnp.ones((1, dim), jnp.float32),   # RMSNorm init = ones
        ffn_norm_w=jnp.ones((1, dim), jnp.float32),
        wq_t=w(ks[1], (dim, dim)),
        wk_t=w(ks[2], (dim, kvd)),
        wv_t=w(ks[3], (dim, kvd)),
        wo_t=w(ks[4], (dim, dim)),
        w1_t=w(ks[5], (dim, hidden)),
        w3_t=w(ks[6], (dim, hidden)),
        w2_t=w(ks[7], (hidden, dim)),
    )

    out = encoder_block_forward(x, params)
    out = jax.block_until_ready(out)

    ref = encoder_block_reference(x, params)
    assert out.shape == (B, S, dim)
    # Kernel feeds bf16 operands to the MXU (f32 accumulation); the reference
    # is pure f32, so compare at a bf16-appropriate tolerance.
    assert jnp.allclose(out, ref, rtol=2e-2, atol=2e-2), "mismatch vs reference"

    # TODO(synk): the PyTorch module mutates self.cache_k/cache_v and cache_idx
    # across calls (and clean_kv_cache); this script models a single forward
    # call on a fresh module (cache_idx=1, zero cache) only.
    print("KERNEL_OK")
</pallas_src>

<mosaic_0001>
module attributes {stable_mosaic.version = 11 : i64} {
  func.func @kernel(%arg0: i32, %arg1: memref<16x64xf32, #tpu.memory_space<vmem>>, %arg2: memref<64x224xbf16, #tpu.memory_space<vmem>>, %arg3: memref<64x64xbf16, #tpu.memory_space<vmem>>, %arg4: memref<64x384xbf16, #tpu.memory_space<vmem>>, %arg5: memref<192x64xbf16, #tpu.memory_space<vmem>>, %arg6: memref<16x64xf32, #tpu.memory_space<vmem>>, %arg7: memref<16x64xf32, #tpu.memory_space<vmem>>, %arg8: memref<16x32xf32, #tpu.memory_space<vmem>>, %arg9: memref<16x32xf32, #tpu.memory_space<vmem>>, %arg10: memref<16x64xf32, #tpu.memory_space<vmem>>) attributes {dimension_semantics = [#tpu.dimension_semantics<arbitrary>], iteration_bounds = array<i64: 1>, scalar_prefetch = 0 : i64, scratch_operands = 0 : i64, tpu.core_type = #tpu.core_type<tc>, window_params = [{pipeline_mode = #tpu.pipeline_mode<synchronous>, transform_indices = @transform_0, window_bounds = array<i64: 16, 64>}, {pipeline_mode = #tpu.pipeline_mode<synchronous>, transform_indices = @transform_1, window_bounds = array<i64: 64, 224>}, {pipeline_mode = #tpu.pipeline_mode<synchronous>, transform_indices = @transform_2, window_bounds = array<i64: 64, 64>}, {pipeline_mode = #tpu.pipeline_mode<synchronous>, transform_indices = @transform_3, window_bounds = array<i64: 64, 384>}, {pipeline_mode = #tpu.pipeline_mode<synchronous>, transform_indices = @transform_4, window_bounds = array<i64: 192, 64>}, {pipeline_mode = #tpu.pipeline_mode<synchronous>, transform_indices = @transform_5, window_bounds = array<i64: 16, 64>}, {pipeline_mode = #tpu.pipeline_mode<synchronous>, transform_indices = @transform_6, window_bounds = array<i64: 16, 64>}, {pipeline_mode = #tpu.pipeline_mode<synchronous>, transform_indices = @transform_7, window_bounds = array<i64: 16, 32>}, {pipeline_mode = #tpu.pipeline_mode<synchronous>, transform_indices = @transform_8, window_bounds = array<i64: 16, 32>}, {pipeline_mode = #tpu.pipeline_mode<synchronous>, transform_indices = @transform_9, window_bounds = array<i64: 16, 64>}]} {
    %c0 = arith.constant 0 : index
    %c0_0 = arith.constant 0 : index
    %0 = vector.load %arg1[%c0, %c0_0] : memref<16x64xf32, #tpu.memory_space<vmem>>, vector<16x64xf32>
    %1 = arith.mulf %0, %0 : vector<16x64xf32>
    %cst = arith.constant dense<0.000000e+00> : vector<16xf32>
    %2 = vector.multi_reduction <add>, %1, %cst [1] : vector<16x64xf32> to vector<16xf32>
    %3 = vector.shape_cast %2 : vector<16xf32> to vector<16x1xf32>
    %cst_1 = arith.constant 6.400000e+01 : f32
    %4 = vector.broadcast %cst_1 : f32 to vector<16x1xf32>
    %5 = arith.divf %3, %4 : vector<16x1xf32>
    %cst_2 = arith.constant 9.99999997E-7 : f32
    %6 = vector.broadcast %cst_2 : f32 to vector<16x1xf32>
    %7 = arith.addf %5, %6 : vector<16x1xf32>
    %8 = math.rsqrt %7 : vector<16x1xf32>
    %9 = vector.broadcast %8 : vector<16x1xf32> to vector<16x64xf32>
    %10 = arith.mulf %0, %9 : vector<16x64xf32>
    %11 = arith.truncf %10 : vector<16x64xf32> to vector<16x64xbf16>
    %c0_3 = arith.constant 0 : index
    %c0_4 = arith.constant 0 : index
    %12 = vector.load %arg2[%c0_3, %c0_4] : memref<64x224xbf16, #tpu.memory_space<vmem>>, vector<64x224xbf16>
    %cst_5 = arith.constant dense<0.000000e+00> : vector<16x224xf32>
    %13 = tpu.matmul %11, %12, %cst_5 {dimension_numbers = #tpu.dot_dimension_numbers<[1], [0], [0], [1], [0, 0, 1, 1], [], []>} : vector<16x64xbf16>, vector<64x224xbf16>, vector<16x224xf32> -> vector<16x224xf32>
    %14 = vector.extract_strided_slice %13 {offsets = [0, 0], sizes = [16, 64], strides = [1, 1]} : vector<16x224xf32> to vector<16x64xf32>
    %15 = vector.extract_strided_slice %13 {offsets = [0, 64], sizes = [16, 64], strides = [1, 1]} : vector<16x224xf32> to vector<16x64xf32>
    %16 = vector.extract_strided_slice %13 {offsets = [0, 128], sizes = [16, 32], strides = [1, 1]} : vector<16x224xf32> to vector<16x32xf32>
    %17 = vector.extract_strided_slice %13 {offsets = [0, 160], sizes = [16, 32], strides = [1, 1]} : vector<16x224xf32> to vector<16x32xf32>
    %18 = vector.extract_strided_slice %13 {offsets = [0, 192], sizes = [16, 32], strides = [1, 1]} : vector<16x224xf32> to vector<16x32xf32>
    %c0_6 = arith.constant 0 : index
    %c0_7 = arith.constant 0 : index
    %19 = vector.load %arg6[%c0_6, %c0_7] : memref<16x64xf32, #tpu.memory_space<vmem>>, vector<16x64xf32>
    %20 = arith.mulf %14, %19 : vector<16x64xf32>
    %c0_8 = arith.constant 0 : index
    %c0_9 = arith.constant 0 : index
    %21 = vector.load %arg7[%c0_8, %c0_9] : memref<16x64xf32, #tpu.memory_space<vmem>>, vector<16x64xf32>
    %22 = arith.mulf %15, %21 : vector<16x64xf32>
    %23 = arith.addf %20, %22 : vector<16x64xf32>
    %c0_10 = arith.constant 0 : index
    %c0_11 = arith.constant 0 : index
    %24 = vector.load %arg8[%c0_10, %c0_11] : memref<16x32xf32, #tpu.memory_space<vmem>>, vector<16x32xf32>
    %25 = arith.mulf %16, %24 : vector<16x32xf32>
    %c0_12 = arith.constant 0 : index
    %c0_13 = arith.constant 0 : index
    %26 = vector.load %arg9[%c0_12, %c0_13] : memref<16x32xf32, #tpu.memory_space<vmem>>, vector<16x32xf32>
    %27 = arith.mulf %17, %26 : vector<16x32xf32>
    %28 = arith.addf %25, %27 : vector<16x32xf32>
    %29 = vector.extract_strided_slice %28 {offsets = [0, 0], sizes = [8, 16], strides = [1, 1]} : vector<16x32xf32> to vector<8x16xf32>
    %30 = arith.truncf %29 : vector<8x16xf32> to vector<8x16xbf16>
    %31 = vector.extract_strided_slice %18 {offsets = [0, 0], sizes = [8, 16], strides = [1, 1]} : vector<16x32xf32> to vector<8x16xf32>
    %32 = arith.truncf %31 : vector<8x16xf32> to vector<8x16xbf16>
    %33 = vector.extract_strided_slice %23 {offsets = [0, 0], sizes = [8, 16], strides = [1, 1]} : vector<16x64xf32> to vector<8x16xf32>
    %34 = vector.extract_strided_slice %23 {offsets = [0, 16], sizes = [8, 16], strides = [1, 1]} : vector<16x64xf32> to vector<8x16xf32>
    %35 = tpu.concatenate %33, %34 in 0 : vector<8x16xf32>, vector<8x16xf32> -> vector<16x16xf32>
    %36 = arith.truncf %35 : vector<16x16xf32> to vector<16x16xbf16>
    %cst_14 = arith.constant dense<0.000000e+00> : vector<16x8xf32>
    %37 = tpu.matmul %36, %30, %cst_14 {dimension_numbers = #tpu.dot_dimension_numbers<[1], [1], [0], [0], [0, 0, 1, 0], [], []>} : vector<16x16xbf16>, vector<8x16xbf16>, vector<16x8xf32> -> vector<16x8xf32>
    %cst_15 = arith.constant 2.500000e-01 : f32
    %38 = vector.broadcast %cst_15 : f32 to vector<16x8xf32>
    %39 = arith.mulf %37, %38 : vector<16x8xf32>
    %cst_16 = arith.constant dense<0xFF800000> : vector<16xf32>
    %40 = vector.multi_reduction <maximumf>, %39, %cst_16 [1] : vector<16x8xf32> to vector<16xf32>
    %41 = vector.shape_cast %40 : vector<16xf32> to vector<16x1xf32>
    %cst_17 = arith.constant 0.000000e+00 : f32
    %42 = vector.broadcast %cst_17 : f32 to vector<16x1xf32>
    %43 = arith.maximumf %41, %42 : vector<16x1xf32>
    %44 = vector.broadcast %43 : vector<16x1xf32> to vector<16x8xf32>
    %45 = arith.subf %39, %44 : vector<16x8xf32>
    %46 = math.exp %45 : vector<16x8xf32>
    %cst_18 = arith.constant dense<0.000000e+00> : vector<16xf32>
    %47 = vector.multi_reduction <add>, %46, %cst_18 [1] : vector<16x8xf32> to vector<16xf32>
    %48 = vector.shape_cast %47 : vector<16xf32> to vector<16x1xf32>
    %cst_19 = arith.constant 0.000000e+00 : f32
    %49 = vector.broadcast %cst_19 : f32 to vector<16x1xf32>
    %50 = arith.subf %49, %43 : vector<16x1xf32>
    %51 = math.exp %50 : vector<16x1xf32>
    %52 = arith.addf %48, %51 : vector<16x1xf32>
    %53 = tpu.reciprocal %52 {approx = true} : vector<16x1xf32> -> vector<16x1xf32>
    %54 = vector.broadcast %53 : vector<16x1xf32> to vector<16x8xf32>
    %55 = arith.mulf %46, %54 : vector<16x8xf32>
    %56 = arith.truncf %55 : vector<16x8xf32> to vector<16x8xbf16>
    %cst_20 = arith.constant dense<0.000000e+00> : vector<16x16xf32>
    %57 = tpu.matmul %56, %32, %cst_20 {dimension_numbers = #tpu.dot_dimension_numbers<[1], [0], [0], [1], [0, 0, 1, 1], [], []>} : vector<16x8xbf16>, vector<8x16xbf16>, vector<16x16xf32> -> vector<16x16xf32>
    %58 = vector.extract_strided_slice %57 {offsets = [0, 0], sizes = [8, 16], strides = [1, 1]} : vector<16x16xf32> to vector<8x16xf32>
    %59 = vector.extract_strided_slice %57 {offsets = [8, 0], sizes = [8, 16], strides = [1, 1]} : vector<16x16xf32> to vector<8x16xf32>
    %60 = vector.extract_strided_slice %28 {offsets = [0, 16], sizes = [8, 16], strides = [1, 1]} : vector<16x32xf32> to vector<8x16xf32>
    %61 = arith.truncf %60 : vector<8x16xf32> to vector<8x16xbf16>
    %62 = vector.extract_strided_slice %18 {offsets = [0, 16], sizes = [8, 16], strides = [1, 1]} : vector<16x32xf32> to vector<8x16xf32>
    %63 = arith.truncf %62 : vector<8x16xf32> to vector<8x16xbf16>
    %64 = vector.extract_strided_slice %23 {offsets = [0, 32], sizes = [8, 16], strides = [1, 1]} : vector<16x64xf32> to vector<8x16xf32>
    %65 = vector.extract_strided_slice %23 {offsets = [0, 48], sizes = [8, 16], strides = [1, 1]} : vector<16x64xf32> to vector<8x16xf32>
    %66 = tpu.concatenate %64, %65 in 0 : vector<8x16xf32>, vector<8x16xf32> -> vector<16x16xf32>
    %67 = arith.truncf %66 : vector<16x16xf32> to vector<16x16xbf16>
    %cst_21 = arith.constant dense<0.000000e+00> : vector<16x8xf32>
    %68 = tpu.matmul %67, %61, %cst_21 {dimension_numbers = #tpu.dot_dimension_numbers<[1], [1], [0], [0], [0, 0, 1, 0], [], []>} : vector<16x16xbf16>, vector<8x16xbf16>, vector<16x8xf32> -> vector<16x8xf32>
    %cst_22 = arith.constant 2.500000e-01 : f32
    %69 = vector.broadcast %cst_22 : f32 to vector<16x8xf32>
    %70 = arith.mulf %68, %69 : vector<16x8xf32>
    %cst_23 = arith.constant dense<0xFF800000> : vector<16xf32>
    %71 = vector.multi_reduction <maximumf>, %70, %cst_23 [1] : vector<16x8xf32> to vector<16xf32>
    %72 = vector.shape_cast %71 : vector<16xf32> to vector<16x1xf32>
    %cst_24 = arith.constant 0.000000e+00 : f32
    %73 = vector.broadcast %cst_24 : f32 to vector<16x1xf32>
    %74 = arith.maximumf %72, %73 : vector<16x1xf32>
    %75 = vector.broadcast %74 : vector<16x1xf32> to vector<16x8xf32>
    %76 = arith.subf %70, %75 : vector<16x8xf32>
    %77 = math.exp %76 : vector<16x8xf32>
    %cst_25 = arith.constant dense<0.000000e+00> : vector<16xf32>
    %78 = vector.multi_reduction <add>, %77, %cst_25 [1] : vector<16x8xf32> to vector<16xf32>
    %79 = vector.shape_cast %78 : vector<16xf32> to vector<16x1xf32>
    %cst_26 = arith.constant 0.000000e+00 : f32
    %80 = vector.broadcast %cst_26 : f32 to vector<16x1xf32>
    %81 = arith.subf %80, %74 : vector<16x1xf32>
    %82 = math.exp %81 : vector<16x1xf32>
    %83 = arith.addf %79, %82 : vector<16x1xf32>
    %84 = tpu.reciprocal %83 {approx = true} : vector<16x1xf32> -> vector<16x1xf32>
    %85 = vector.broadcast %84 : vector<16x1xf32> to vector<16x8xf32>
    %86 = arith.mulf %77, %85 : vector<16x8xf32>
    %87 = arith.truncf %86 : vector<16x8xf32> to vector<16x8xbf16>
    %cst_27 = arith.constant dense<0.000000e+00> : vector<16x16xf32>
    %88 = tpu.matmul %87, %63, %cst_27 {dimension_numbers = #tpu.dot_dimension_numbers<[1], [0], [0], [1], [0, 0, 1, 1], [], []>} : vector<16x8xbf16>, vector<8x16xbf16>, vector<16x16xf32> -> vector<16x16xf32>
    %89 = vector.extract_strided_slice %88 {offsets = [0, 0], sizes = [8, 16], strides = [1, 1]} : vector<16x16xf32> to vector<8x16xf32>
    %90 = vector.extract_strided_slice %88 {offsets = [8, 0], sizes = [8, 16], strides = [1, 1]} : vector<16x16xf32> to vector<8x16xf32>
    %91 = tpu.concatenate %58, %59, %89, %90 in 1 : vector<8x16xf32>, vector<8x16xf32>, vector<8x16xf32>, vector<8x16xf32> -> vector<8x64xf32>
    %92 = vector.extract_strided_slice %28 {offsets = [8, 0], sizes = [8, 16], strides = [1, 1]} : vector<16x32xf32> to vector<8x16xf32>
    %93 = arith.truncf %92 : vector<8x16xf32> to vector<8x16xbf16>
    %94 = vector.extract_strided_slice %18 {offsets = [8, 0], sizes = [8, 16], strides = [1, 1]} : vector<16x32xf32> to vector<8x16xf32>
    %95 = arith.truncf %94 : vector<8x16xf32> to vector<8x16xbf16>
    %96 = vector.extract_strided_slice %23 {offsets = [8, 0], sizes = [8, 16], strides = [1, 1]} : vector<16x64xf32> to vector<8x16xf32>
    %97 = vector.extract_strided_slice %23 {offsets = [8, 16], sizes = [8, 16], strides = [1, 1]} : vector<16x64xf32> to vector<8x16xf32>
    %98 = tpu.concatenate %96, %97 in 0 : vector<8x16xf32>, vector<8x16xf32> -> vector<16x16xf32>
    %99 = arith.truncf %98 : vector<16x16xf32> to vector<16x16xbf16>
    %cst_28 = arith.constant dense<0.000000e+00> : vector<16x8xf32>
    %100 = tpu.matmul %99, %93, %cst_28 {dimension_numbers = #tpu.dot_dimension_numbers<[1], [1], [0], [0], [0, 0, 1, 0], [], []>} : vector<16x16xbf16>, vector<8x16xbf16>, vector<16x8xf32> -> vector<16x8xf32>
    %cst_29 = arith.constant 2.500000e-01 : f32
    %101 = vector.broadcast %cst_29 : f32 to vector<16x8xf32>
    %102 = arith.mulf %100, %101 : vector<16x8xf32>
    %cst_30 = arith.constant dense<0xFF800000> : vector<16xf32>
    %103 = vector.multi_reduction <maximumf>, %102, %cst_30 [1] : vector<16x8xf32> to vector<16xf32>
    %104 = vector.shape_cast %103 : vector<16xf32> to vector<16x1xf32>
    %cst_31 = arith.constant 0.000000e+00 : f32
    %105 = vector.broadcast %cst_31 : f32 to vector<16x1xf32>
    %106 = arith.maximumf %104, %105 : vector<16x1xf32>
    %107 = vector.broadcast %106 : vector<16x1xf32> to vector<16x8xf32>
    %108 = arith.subf %102, %107 : vector<16x8xf32>
    %109 = math.exp %108 : vector<16x8xf32>
    %cst_32 = arith.constant dense<0.000000e+00> : vector<16xf32>
    %110 = vector.multi_reduction <add>, %109, %cst_32 [1] : vector<16x8xf32> to vector<16xf32>
    %111 = vector.shape_cast %110 : vector<16xf32> to vector<16x1xf32>
    %cst_33 = arith.constant 0.000000e+00 : f32
    %112 = vector.broadcast %cst_33 : f32 to vector<16x1xf32>
    %113 = arith.subf %112, %106 : vector<16x1xf32>
    %114 = math.exp %113 : vector<16x1xf32>
    %115 = arith.addf %111, %114 : vector<16x1xf32>
    %116 = tpu.reciprocal %115 {approx = true} : vector<16x1xf32> -> vector<16x1xf32>
    %117 = vector.broadcast %116 : vector<16x1xf32> to vector<16x8xf32>
    %118 = arith.mulf %109, %117 : vector<16x8xf32>
    %119 = arith.truncf %118 : vector<16x8xf32> to vector<16x8xbf16>
    %cst_34 = arith.constant dense<0.000000e+00> : vector<16x16xf32>
    %120 = tpu.matmul %119, %95, %cst_34 {dimension_numbers = #tpu.dot_dimension_numbers<[1], [0], [0], [1], [0, 0, 1, 1], [], []>} : vector<16x8xbf16>, vector<8x16xbf16>, vector<16x16xf32> -> vector<16x16xf32>
    %121 = vector.extract_strided_slice %120 {offsets = [0, 0], sizes = [8, 16], strides = [1, 1]} : vector<16x16xf32> to vector<8x16xf32>
    %122 = vector.extract_strided_slice %120 {offsets = [8, 0], sizes = [8, 16], strides = [1, 1]} : vector<16x16xf32> to vector<8x16xf32>
    %123 = vector.extract_strided_slice %28 {offsets = [8, 16], sizes = [8, 16], strides = [1, 1]} : vector<16x32xf32> to vector<8x16xf32>
    %124 = arith.truncf %123 : vector<8x16xf32> to vector<8x16xbf16>
    %125 = vector.extract_strided_slice %18 {offsets = [8, 16], sizes = [8, 16], strides = [1, 1]} : vector<16x32xf32> to vector<8x16xf32>
    %126 = arith.truncf %125 : vector<8x16xf32> to vector<8x16xbf16>
    %127 = vector.extract_strided_slice %23 {offsets = [8, 32], sizes = [8, 16], strides = [1, 1]} : vector<16x64xf32> to vector<8x16xf32>
    %128 = vector.extract_strided_slice %23 {offsets = [8, 48], sizes = [8, 16], strides = [1, 1]} : vector<16x64xf32> to vector<8x16xf32>
    %129 = tpu.concatenate %127, %128 in 0 : vector<8x16xf32>, vector<8x16xf32> -> vector<16x16xf32>
    %130 = arith.truncf %129 : vector<16x16xf32> to vector<16x16xbf16>
    %cst_35 = arith.constant dense<0.000000e+00> : vector<16x8xf32>
    %131 = tpu.matmul %130, %124, %cst_35 {dimension_numbers = #tpu.dot_dimension_numbers<[1], [1], [0], [0], [0, 0, 1, 0], [], []>} : vector<16x16xbf16>, vector<8x16xbf16>, vector<16x8xf32> -> vector<16x8xf32>
    %cst_36 = arith.constant 2.500000e-01 : f32
    %132 = vector.broadcast %cst_36 : f32 to vector<16x8xf32>
    %133 = arith.mulf %131, %132 : vector<16x8xf32>
    %cst_37 = arith.constant dense<0xFF800000> : vector<16xf32>
    %134 = vector.multi_reduction <maximumf>, %133, %cst_37 [1] : vector<16x8xf32> to vector<16xf32>
    %135 = vector.shape_cast %134 : vector<16xf32> to vector<16x1xf32>
    %cst_38 = arith.constant 0.000000e+00 : f32
    %136 = vector.broadcast %cst_38 : f32 to vector<16x1xf32>
    %137 = arith.maximumf %135, %136 : vector<16x1xf32>
    %138 = vector.broadcast %137 : vector<16x1xf32> to vector<16x8xf32>
    %139 = arith.subf %133, %138 : vector<16x8xf32>
    %140 = math.exp %139 : vector<16x8xf32>
    %cst_39 = arith.constant dense<0.000000e+00> : vector<16xf32>
    %141 = vector.multi_reduction <add>, %140, %cst_39 [1] : vector<16x8xf32> to vector<16xf32>
    %142 = vector.shape_cast %141 : vector<16xf32> to vector<16x1xf32>
    %cst_40 = arith.constant 0.000000e+00 : f32
    %143 = vector.broadcast %cst_40 : f32 to vector<16x1xf32>
    %144 = arith.subf %143, %137 : vector<16x1xf32>
    %145 = math.exp %144 : vector<16x1xf32>
    %146 = arith.addf %142, %145 : vector<16x1xf32>
    %147 = tpu.reciprocal %146 {approx = true} : vector<16x1xf32> -> vector<16x1xf32>
    %148 = vector.broadcast %147 : vector<16x1xf32> to vector<16x8xf32>
    %149 = arith.mulf %140, %148 : vector<16x8xf32>
    %150 = arith.truncf %149 : vector<16x8xf32> to vector<16x8xbf16>
    %cst_41 = arith.constant dense<0.000000e+00> : vector<16x16xf32>
    %151 = tpu.matmul %150, %126, %cst_41 {dimension_numbers = #tpu.dot_dimension_numbers<[1], [0], [0], [1], [0, 0, 1, 1], [], []>} : vector<16x8xbf16>, vector<8x16xbf16>, vector<16x16xf32> -> vector<16x16xf32>
    %152 = vector.extract_strided_slice %151 {offsets = [0, 0], sizes = [8, 16], strides = [1, 1]} : vector<16x16xf32> to vector<8x16xf32>
    %153 = vector.extract_strided_slice %151 {offsets = [8, 0], sizes = [8, 16], strides = [1, 1]} : vector<16x16xf32> to vector<8x16xf32>
    %154 = tpu.concatenate %121, %122, %152, %153 in 1 : vector<8x16xf32>, vector<8x16xf32>, vector<8x16xf32>, vector<8x16xf32> -> vector<8x64xf32>
    %155 = tpu.concatenate %91, %154 in 0 : vector<8x64xf32>, vector<8x64xf32> -> vector<16x64xf32>
    %156 = arith.truncf %155 : vector<16x64xf32> to vector<16x64xbf16>
    %c0_42 = arith.constant 0 : index
    %c0_43 = arith.constant 0 : index
    %157 = vector.load %arg3[%c0_42, %c0_43] : memref<64x64xbf16, #tpu.memory_space<vmem>>, vector<64x64xbf16>
    %cst_44 = arith.constant dense<0.000000e+00> : vector<16x64xf32>
    %158 = tpu.matmul %156, %157, %cst_44 {dimension_numbers = #tpu.dot_dimension_numbers<[1], [0], [0], [1], [0, 0, 1, 1], [], []>} : vector<16x64xbf16>, vector<64x64xbf16>, vector<16x64xf32> -> vector<16x64xf32>
    %159 = arith.addf %0, %158 : vector<16x64xf32>
    %160 = arith.mulf %159, %159 : vector<16x64xf32>
    %cst_45 = arith.constant dense<0.000000e+00> : vector<16xf32>
    %161 = vector.multi_reduction <add>, %160, %cst_45 [1] : vector<16x64xf32> to vector<16xf32>
    %162 = vector.shape_cast %161 : vector<16xf32> to vector<16x1xf32>
    %cst_46 = arith.constant 6.400000e+01 : f32
    %163 = vector.broadcast %cst_46 : f32 to vector<16x1xf32>
    %164 = arith.divf %162, %163 : vector<16x1xf32>
    %cst_47 = arith.constant 9.99999997E-7 : f32
    %165 = vector.broadcast %cst_47 : f32 to vector<16x1xf32>
    %166 = arith.addf %164, %165 : vector<16x1xf32>
    %167 = math.rsqrt %166 : vector<16x1xf32>
    %168 = vector.broadcast %167 : vector<16x1xf32> to vector<16x64xf32>
    %169 = arith.mulf %159, %168 : vector<16x64xf32>
    %170 = arith.truncf %169 : vector<16x64xf32> to vector<16x64xbf16>
    %c0_48 = arith.constant 0 : index
    %c0_49 = arith.constant 0 : index
    %171 = vector.load %arg4[%c0_48, %c0_49] : memref<64x384xbf16, #tpu.memory_space<vmem>>, vector<64x384xbf16>
    %cst_50 = arith.constant dense<0.000000e+00> : vector<16x384xf32>
    %172 = tpu.matmul %170, %171, %cst_50 {dimension_numbers = #tpu.dot_dimension_numbers<[1], [0], [0], [1], [0, 0, 1, 1], [], []>} : vector<16x64xbf16>, vector<64x384xbf16>, vector<16x384xf32> -> vector<16x384xf32>
    %173 = vector.extract_strided_slice %172 {offsets = [0, 0], sizes = [16, 192], strides = [1, 1]} : vector<16x384xf32> to vector<16x192xf32>
    %174 = vector.extract_strided_slice %172 {offsets = [0, 192], sizes = [16, 192], strides = [1, 1]} : vector<16x384xf32> to vector<16x192xf32>
    %175 = arith.negf %173 : vector<16x192xf32>
    %176 = math.exp %175 : vector<16x192xf32>
    %cst_51 = arith.constant 1.000000e+00 : f32
    %177 = vector.broadcast %cst_51 : f32 to vector<16x192xf32>
    %178 = arith.addf %177, %176 : vector<16x192xf32>
    %179 = arith.divf %177, %178 : vector<16x192xf32>
    %180 = arith.mulf %173, %179 : vector<16x192xf32>
    %181 = arith.mulf %180, %174 : vector<16x192xf32>
    %182 = arith.truncf %181 : vector<16x192xf32> to vector<16x192xbf16>
    %c0_52 = arith.constant 0 : index
    %c0_53 = arith.constant 0 : index
    %183 = vector.load %arg5[%c0_52, %c0_53] : memref<192x64xbf16, #tpu.memory_space<vmem>>, vector<192x64xbf16>
    %cst_54 = arith.constant dense<0.000000e+00> : vector<16x64xf32>
    %184 = tpu.matmul %182, %183, %cst_54 {dimension_numbers = #tpu.dot_dimension_numbers<[1], [0], [0], [1], [0, 0, 1, 1], [], []>} : vector<16x192xbf16>, vector<192x64xbf16>, vector<16x64xf32> -> vector<16x64xf32>
    %185 = arith.addf %159, %184 : vector<16x64xf32>
    %c0_55 = arith.constant 0 : index
    %c0_56 = arith.constant 0 : index
    %186 = vector.load %arg10[%c0_55, %c0_56] : memref<16x64xf32, #tpu.memory_space<vmem>>, vector<16x64xf32>
    tpu.vector_store %arg10[%c0_55, %c0_56], %185 {strides = array<i32>} : memref<16x64xf32, #tpu.memory_space<vmem>>, vector<16x64xf32>,
    return
  }
  func.func @transform_0(%arg0: i32) -> (i32, i32) {
    %c0_i32 = arith.constant 0 : i32
    %c0_i32_0 = arith.constant 0 : i32
    %c0_i32_1 = arith.constant 0 : i32
    return %c0_i32, %c0_i32_0 : i32, i32
  }
  func.func @transform_1(%arg0: i32) -> (i32, i32) {
    %c0_i32 = arith.constant 0 : i32
    %c0_i32_0 = arith.constant 0 : i32
    %c0_i32_1 = arith.constant 0 : i32
    return %c0_i32, %c0_i32_0 : i32, i32
  }
  func.func @transform_2(%arg0: i32) -> (i32, i32) {
    %c0_i32 = arith.constant 0 : i32
    %c0_i32_0 = arith.constant 0 : i32
    %c0_i32_1 = arith.constant 0 : i32
    return %c0_i32, %c0_i32_0 : i32, i32
  }
  func.func @transform_3(%arg0: i32) -> (i32, i32) {
    %c0_i32 = arith.constant 0 : i32
    %c0_i32_0 = arith.constant 0 : i32
    %c0_i32_1 = arith.constant 0 : i32
    return %c0_i32, %c0_i32_0 : i32, i32
  }
  func.func @transform_4(%arg0: i32) -> (i32, i32) {
    %c0_i32 = arith.constant 0 : i32
    %c0_i32_0 = arith.constant 0 : i32
    %c0_i32_1 = arith.constant 0 : i32
    return %c0_i32, %c0_i32_0 : i32, i32
  }
  func.func @transform_5(%arg0: i32) -> (i32, i32) {
    %c0_i32 = arith.constant 0 : i32
    %c0_i32_0 = arith.constant 0 : i32
    %c0_i32_1 = arith.constant 0 : i32
    return %c0_i32, %c0_i32_0 : i32, i32
  }
  func.func @transform_6(%arg0: i32) -> (i32, i32) {
    %c0_i32 = arith.constant 0 : i32
    %c0_i32_0 = arith.constant 0 : i32
    %c0_i32_1 = arith.constant 0 : i32
    return %c0_i32, %c0_i32_0 : i32, i32
  }
  func.func @transform_7(%arg0: i32) -> (i32, i32) {
    %c0_i32 = arith.constant 0 : i32
    %c0_i32_0 = arith.constant 0 : i32
    %c0_i32_1 = arith.constant 0 : i32
    return %c0_i32, %c0_i32_0 : i32, i32
  }
  func.func @transform_8(%arg0: i32) -> (i32, i32) {
    %c0_i32 = arith.constant 0 : i32
    %c0_i32_0 = arith.constant 0 : i32
    %c0_i32_1 = arith.constant 0 : i32
    return %c0_i32, %c0_i32_0 : i32, i32
  }
  func.func @transform_9(%arg0: i32) -> (i32, i32) {
    %c0_i32 = arith.constant 0 : i32
    %c0_i32_0 = arith.constant 0 : i32
    %c0_i32_1 = arith.constant 0 : i32
    return %c0_i32, %c0_i32_0 : i32, i32
  }
}

</mosaic_0001>

<bundles_post_ra>
// kernel: tpu_custom_call.1
= control target key start
LH: loop header
LB: loop body
LE: loop exit
PB: predicated region body
PF: predicated region fallthrough
CT: control target
= control target key end

     0   :  { %14 = vsyncpa [#allocation3], 0  ;;  %s2095_s0 = inlined_call_operand.hbm [shape: f32[16,64], index: 0, kind: input, shape index: {}]   ;;  %s2096_s1 = inlined_call_operand.vmem [shape: bf16[64,224], index: 1, kind: input, shape index: {}]   ;;  %s2097_s2 = inlined_call_operand.hbm [shape: bf16[64,64], index: 2, kind: input, shape index: {}]   ;;  %s2098_s3 = inlined_call_operand.vmem [shape: bf16[64,384], index: 3, kind: input, shape index: {}]   ;;  %s2099_s4 = inlined_call_operand.vmem [shape: bf16[192,64], index: 4, kind: input, shape index: {}]   ;;  %s2100_s5 = inlined_call_operand.hbm [shape: f32[16,64], index: 5, kind: input, shape index: {}]   ;;  %s2101_s6 = inlined_call_operand.hbm [shape: f32[16,64], index: 6, kind: input, shape index: {}]   ;;  %s2102_s7 = inlined_call_operand.hbm [shape: f32[16,32], index: 7, kind: input, shape index: {}]   ;;  %s2103_s8 = inlined_call_operand.hbm [shape: f32[16,32], index: 8, kind: input, shape index: {}]   ;;  %s2104_s9 = inlined_call_operand.hbm [shape: f32[16,64], index: 9, kind: output, shape index: {}]  }
   0x1   :  { %15 = vsyncpa [#allocation6], 0 }
   0x2   :  { %16 = vsyncpa [#allocation9], 0 }
   0x3   :  { %17 = vsyncpa [#allocation12], 0  ;;  %s38_s11 = sshll.u32 %s2097_s2, 4  ;;  %s39_s11 = int_to_ptr.hbm [resolvable:$true] %s38_s11 }
   0x4   :  { %18 = vsyncpa [#allocation4], 0  ;;  %s1627_s12 = smov [#allocation5]   ;;  %s1628_s14 = smov 64  }
   0x5   :  { %s40_s13 = sshll.u32 %s1627_s12, 4  ;;  %s1629_s15 = smov 4   ;;  %s41_s13 = int_to_ptr.vmem [resolvable:$true] %s40_s13 }
   0x6   :  { %46 = dma.hbm_to_vmem [thread:$0]  %s39_s11, 512, %s41_s13, [#allocation6], %s1628_s14, %s1628_s14, %s1629_s15  }
   0x7   :  { %s68_s18 = sshll.u32 %s2101_s6, 4  ;;  %s1630_s19 = smov [#allocation8]   ;;  %s69_s18 = int_to_ptr.hbm [resolvable:$true] %s68_s18 }
   0x8   :  { %s70_s20 = sshll.u32 %s1630_s19, 4  ;;  %s23_s2 = sshll.u32 %s2095_s0, 4  ;;  %s71_s20 = int_to_ptr.vmem [resolvable:$true] %s70_s20  ;;  %s24_s2 = int_to_ptr.hbm [resolvable:$true] %s23_s2 }
   0x9   :  { %s1631_s23 = smov 128   ;;  %s1632_s24 = smov 8  }
   0xa   :  { %76 = dma.hbm_to_vmem [thread:$0]  %s69_s18, 256, %s71_s20, [#allocation9], %s1631_s23, %s1631_s23, %s1632_s24  }
   0xb   :  { %s55_s27 = sshll.u32 %s2100_s5, 4  ;;  %s1633_s6 = smov [#allocation2]   ;;  %s56_s27 = int_to_ptr.hbm [resolvable:$true] %s55_s27 }
   0xc   :  { %s25_s28 = sshll.u32 %s1633_s6, 4  ;;  %s1634_s0 = smov [#allocation7]   ;;  %s26_s28 = int_to_ptr.vmem [resolvable:$true] %s25_s28 }
   0xd   :  { %31 = dma.hbm_to_vmem [thread:$0]  %s24_s2, 256, %s26_s28, [#allocation3], %s1631_s23, %s1631_s23, %s1632_s24  }
   0xe   :  { %s57_s29 = sshll.u32 %s1634_s0, 4  ;;  %s81_s11 = sshll.u32 %s2102_s7, 4  ;;  %s58_s29 = int_to_ptr.vmem [resolvable:$true] %s57_s29  ;;  %s82_s11 = int_to_ptr.hbm [resolvable:$true] %s81_s11 }
   0xf   :  { %63 = dma.hbm_to_vmem [thread:$0]  %s56_s27, 256, %s58_s29, [#allocation6], %s1631_s23, %s1631_s23, %s1632_s24  }
  0x10   :  { %s94_s13 = sshll.u32 %s2103_s8, 4  ;;  %s1635_s15 = smov [#allocation10]   ;;  %s95_s13 = int_to_ptr.hbm [resolvable:$true] %s94_s13 }
  0x11   :  { %s83_s16 = sshll.u32 %s1635_s15, 4  ;;  %s1636_s17 = smov [#allocation11]   ;;  %s84_s16 = int_to_ptr.vmem [resolvable:$true] %s83_s16 }
  0x12   :  { %89 = dma.hbm_to_vmem [thread:$0]  %s82_s11, 256, %s84_s16, [#allocation9], %s1631_s23, %s1631_s23, %s1632_s24  }
  0x13   :  { %s96_s7 = sshll.u32 %s1636_s17, 4  ;;  %s97_s7 = int_to_ptr.vmem [resolvable:$true] %s96_s7 }
  0x14   :  { %102 = dma.hbm_to_vmem [thread:$0]  %s95_s13, 256, %s97_s7, [#allocation12], %s1631_s23, %s1631_s23, %s1632_s24  }
  0x15   :  { %1617 = dma.done.wait [#allocation3], 256  }
  0x16   :  { %1618 = vsyncadd [#allocation3], 4294967040 }
  0x17   :  { %1619 = dma.done.wait [#allocation6], 768  }
  0x18   :  { %1620 = vsyncadd [#allocation6], 4294966528 }
  0x19   :  { %1621 = dma.done.wait [#allocation9], 512  }
  0x1a   :  { %1622 = vsyncadd [#allocation9], 4294966784 }
  0x1b   :  { %1623 = dma.done.wait [#allocation12], 256  }
  0x1c   :  { %1624 = vsyncadd [#allocation12], 4294967040  ;;  %v1729_v0 = vld [vmem:[#allocation2] sm:$0xff]  ;;  %vm132_vm0 = vcmask 523264   ;;  %v1733_v2 = vld [vmem:[#allocation2 + $0x8] sm:$0xff]  ;;  %v1637_v6 = vmov 64.0  }
  0x1d   :  { %v130_v1 = vmul.f32 %v1729_v0, %v1729_v0  ;;  %v131_v4 = vmul.f32 %v1733_v2, %v1733_v2  ;;  %1375 = vrcp.f32 %v1637_v6  ;;  %v1170_v9 = vld [vmem:[%s2096_s1 + $0x30] sm:$0xf]  ;;  %v1314_v10 = vld [vmem:[%s2096_s1 + $0x34] sm:$0xf0]  ;;  %v1313_v11 = vld [vmem:[%s2096_s1 + $0x34] sm:$0xf] }
  0x1e   :  { %v1171_v13 = vor.u32 %v1314_v10, %v1170_v9  ;;  %v1172_v14 = vld [vmem:[%s2096_s1 + $0x38] sm:$0xf0]  ;;  %v1162_v16 = vld [vmem:[%s2096_s1 + $0x20] sm:$0xf]  ;;  %v1312_v17 = vld [vmem:[%s2096_s1 + $0x24] sm:$0xf0] }
  0x1f   :  { %v133_v3 = vsel %vm132_vm0, %v130_v1, 0.0  ;;  %v136_v5 = vsel %vm132_vm0, %v131_v4, 0.0  ;;  %v1175_v15 = vor.u32 %v1313_v11, %v1172_v14  ;;  %v1311_v18 = vld [vmem:[%s2096_s1 + $0x24] sm:$0xf]  ;;  %v1163_v20 = vor.u32 %v1312_v17, %v1162_v16  ;;  %v1164_v21 = vld [vmem:[%s2096_s1 + $0x28] sm:$0xf0] }
  0x20   :  { %134 = vadd.xlane.f32.xlu0 %v133_v3  ;;  %228 = vmatpush.bf16.msra.mxu0 %v1171_v13  ;;  %v1167_v22 = vor.u32 %v1311_v18, %v1164_v21  ;;  %v1154_v23 = vld [vmem:[%s2096_s1 + $0x10] sm:$0xf]  ;;  %v1310_v24 = vld [vmem:[%s2096_s1 + $0x14] sm:$0xf0]  ;;  %v1309_v25 = vld [vmem:[%s2096_s1 + $0x14] sm:$0xf] }
  0x21   :  { %242 = vmatpush.bf16.msra.mxu1 %v1175_v15  ;;  %v1155_v27 = vor.u32 %v1310_v24, %v1154_v23  ;;  %v1156_v28 = vld [vmem:[%s2096_s1 + $0x18] sm:$0xf0]  ;;  %v1146_v30 = vld [vmem:[%s2096_s1] sm:$0xf]  ;;  %v1308_v31 = vld [vmem:[%s2096_s1 + $0x4] sm:$0xf0] }
  0x22   :  { %v1159_v29 = vor.u32 %v1309_v25, %v1156_v28  ;;  %v1307_v32 = vld [vmem:[%s2096_s1 + $0x4] sm:$0xf]  ;;  %v1147_v33 = vor.u32 %v1308_v31, %v1146_v30  ;;  %v1148_v34 = vld [vmem:[%s2096_s1 + $0x8] sm:$0xf0]  ;;  %s1638_s1 = smov 32   ;;  %s1639_s26 = smov 96  }
  0x23   :  { %v1376_v7 = vpop.eup %1375  ;;  %v1151_v36 = vor.u32 %v1307_v32, %v1148_v34  ;;  %v256_v40 = vld [vmem:[#allocation8] sm:$0xff]  ;;  %v257_v49 = vld [vmem:[#allocation8 + $0x8] sm:$0xff]  ;;  %s1640_s27 = smov 112   ;;  %v278_v11 = vld [vmem:[#allocation10] sm:$0xff]  ;;  %vm311_vm8 = vcmask 130048   ;;  %vm334_vm9 = vcmask 64512  }
  0x24   :  { %v140_v8 = vmul.f32 64.0, %v1376_v7  ;;  %229 = vmatpush.bf16.msra.mxu0 %v1163_v20  ;;  %vm144_vm1 = vweird.f32 %v1376_v7  ;;  %260 = vrot.lane.b32.xlu1 %v256_v40, %s1628_s14  ;;  %v282_v43 = vld [vmem:[#allocation11] sm:$0xff]  ;;  %v283_v14 = vld [vmem:[#allocation11 + $0x8] sm:$0xff]  ;;  %vm374_vm10 = vcmask 1043456   ;;  %s1641_s6 = smov 48   ;;  %s1642_s28 = smov 16  }
  0x25   :  { %243 = vmatpush.bf16.msra.mxu1 %v1167_v22  ;;  %vm488_vm11 = vcmask 261120   ;;  %vm490_vm12 = vcmask 392192  }
  0x26   :  { %v141_v12 = vsub.f32 1.0, %v140_v8 }
  0x28   :  { %137 = vadd.xlane.f32.xlu0 %v136_v5  ;;  %v142_v19 = vmul.f32 %v1376_v7, %v141_v12  ;;  %230 = vmatpush.bf16.msra.mxu0 %v1155_v27 }
  0x29   :  { %244 = vmatpush.bf16.msra.mxu1 %v1159_v29 }
  0x2a   :  { %v143_v26 = vadd.f32 %v1376_v7, %v142_v19 }
  0x2c   :  { %v1787_v35 = vsel %vm144_vm1, %v1376_v7, %v143_v26  ;;  %231 = vmatpush.bf16.msra.mxu0 %v1147_v33  ;;  %286 = vrot.lane.b32.xlu1 %v282_v43, %s1638_s1  ;;  %v252_v7 = vld [vmem:[#allocation7] sm:$0xff] }
  0x2d   :  { %245 = vmatpush.bf16.msra.mxu1 %v1151_v36 }
  0x34   :  { %262 = vrot.lane.b32.xlu1 %v257_v49, %s1628_s14  ;;  %v253_v49 = vld [vmem:[#allocation7 + $0x8] sm:$0xff] }
  0x93   :  { %v135_v37 = vpop.xlane.xlu0 %134 }
  0x94   :  { %v146_v38 = vmul.f32 %v1787_v35, %v135_v37 }
  0x96   :  { %v148_v39 = vadd.f32 1e-06, %v146_v38  ;;  %v261_v63 = vpop.permute.xlu1 %260 }
  0x98   :  { %1377 = vrsqrt.f32 %v148_v39  ;;  %vm156_vm3 = vweird.f32 %v148_v39 }
  0x9b   :  { %v138_v41 = vpop.xlane.xlu0 %137 }
  0x9c   :  { %v147_v42 = vmul.f32 %v1787_v35, %v138_v41 }
  0x9e   :  { %v1378_v44 = vpop.eup %1377  ;;  %v149_v45 = vadd.f32 1e-06, %v147_v42  ;;  %v287_v4 = vpop.permute.xlu1 %286 }
  0x9f   :  { %v151_v46 = vmul.f32 %v1378_v44, %v148_v39  ;;  %vm157_vm2 = vweird.f32 %v1378_v44 }
  0xa0   :  { %1379 = vrsqrt.f32 %v149_v45  ;;  %vm158_vm5 = vmor %vm156_vm3, %vm157_vm2  ;;  %vm166_vm6 = vweird.f32 %v149_v45 }
  0xa1   :  { %v152_v47 = vmul.f32 %v1378_v44, %v151_v46 }
  0xa3   :  { %v153_v48 = vmul.f32 0.5, %v152_v47 }
  0xa5   :  { %v154_v51 = vsub.f32 1.5, %v153_v48 }
  0xa6   :  { %v1380_v50 = vpop.eup %1379  ;;  %v263_v18 = vpop.permute.xlu1 %262 }
  0xa7   :  { %v161_v52 = vmul.f32 %v1380_v50, %v149_v45  ;;  %v155_v54 = vmul.f32 %v1378_v44, %v154_v51  ;;  %vm167_vm4 = vweird.f32 %v1380_v50 }
  0xa8   :  { %vm168_vm7 = vmor %vm166_vm6, %vm167_vm4 }
  0xa9   :  { %v162_v53 = vmul.f32 %v1380_v50, %v161_v52  ;;  %v159_v58 = vsel %vm158_vm5, %v1378_v44, %v155_v54  ;;  %v279_v54 = vld [vmem:[#allocation10 + $0x8] sm:$0xff] }
  0xaa   :  { %v170_v60 = vmul.f32 %v159_v58, %v1729_v0 }
  0xab   :  { %v163_v55 = vmul.f32 0.5, %v162_v53 }
  0xad   :  { %v164_v56 = vsub.f32 1.5, %v163_v55 }
  0xaf   :  { %v165_v57 = vmul.f32 %v1380_v50, %v164_v56 }
  0xb1   :  { %v169_v59 = vsel %vm168_vm7, %v1380_v50, %v165_v57 }
  0xb2   :  { %v171_v61 = vmul.f32 %v169_v59, %v1733_v2 }
  0xb4   :  { %v172_v62 = vpack.c.bf16 %v171_v61, %v170_v60 }
  0xb6   :  { %1176 = vmatmul.msk.bf16.vlgmr.msra.gmra.mxu0 %vm132_vm0, %v172_v62  ;;  %1177 = vmatmul.msk.bf16.vlgmr.msra.gmra.mxu1 %vm132_vm0, %v172_v62 }
 0x133   :  { %v233_v1 = vpop.f32.mrf.mxu0  ;;  %v247_v5 = vpop.f32.mrf.mxu1 }
 0x134   :  { %v266_v3 = vmul.f32 %v261_v63, %v233_v1  ;;  %v292_v6 = vmul.f32 %v287_v4, %v247_v5  ;;  %v254_v8 = vmul.f32 %v252_v7, %v233_v1  ;;  %v280_v12 = vmul.f32 %v278_v11, %v247_v5 }
 0x135   :  { %v1807_v29 = vpack.c.bf16 %v247_v5, %v247_v5 }
 0x136   :  { %270 = vrot.lane.b32.xlu2 %v266_v3, %s1628_s14 }
 0x13b   :  { %v235_v19 = vpop.f32.mrf.mxu0  ;;  %v1811_v31 = vpop.f32.mrf.mxu1 }
 0x13c   :  { %v267_v20 = vmul.f32 %v263_v18, %v235_v19  ;;  %v255_v53 = vmul.f32 %v253_v49, %v235_v19  ;;  %v281_v56 = vmul.f32 %v279_v54, %v1811_v31 }
 0x13e   :  { %296 = vrot.lane.b32.xlu2 %v292_v6, %s1639_s26 }
 0x190   :  { %v271_v9 = vpop.permute.xlu2 %270 }
 0x191   :  { %v276_v10 = vadd.f32 %v271_v9, %v254_v8 }
 0x193   :  { %307 = vrot.lane.b32.xlu0 %v276_v10, %s1640_s27 }
 0x198   :  { %v297_v13 = vpop.permute.xlu2 %296 }
 0x199   :  { %v302_v15 = vadd.f32 %v297_v13, %v280_v12 }
 0x19b   :  { %v304_v16 = vpack.c.bf16 %v302_v15, %v302_v15  ;;  %288 = vrot.lane.b32.xlu0 %v283_v14, %s1638_s1 }
 0x19d   :  { %v316_v17 = vsel %vm311_vm8, %v304_v16, 0 }
 0x19e   :  { %325 = vmatpush.bf16.xpose.msra.mxu2 %v316_v17 }
 0x1a3   :  { %272 = vrot.lane.b32.xlu0 %v267_v20, %s1628_s14 }
 0x205   :  { %v308_v21 = vpop.permute.xlu0 %307 }
 0x206   :  { %v310_v22 = vpack.c.bf16 %v308_v21, %v276_v10 }
 0x208   :  { %1178 = vmatmul.msk.bf16.vlgmr.msra.gmra.mxu2 %vm311_vm8, %v310_v22 }
 0x20d   :  { %v289_v30 = vpop.permute.xlu0 %288 }
 0x20e   :  { %v293_v32 = vmul.f32 %v289_v30, %v1811_v31 }
 0x215   :  { %v273_v52 = vpop.permute.xlu0 %272 }
 0x216   :  { %v277_v55 = vadd.f32 %v273_v52, %v255_v53 }
 0x28b   :  { %v327_v23 = vpop.f32.mrf.mxu2 }
 0x28c   :  { %v332_v24 = vmul.f32 0.25, %v327_v23 }
 0x28e   :  { %v335_v25 = vsel %vm334_vm9, %v332_v24, -inf }
 0x28f   :  { %336 = vmax.xlane.f32.xlu2 %v335_v25 }
 0x293   :  { %v329_v26 = vpop.f32.mrf.mxu2 }
 0x294   :  { %v333_v27 = vmul.f32 0.25, %v329_v26 }
 0x296   :  { %v338_v28 = vsel %vm334_vm9, %v333_v27, -inf }
 0x297   :  { %339 = vmax.xlane.f32.xlu1 %v338_v28 }
 0x2a7   :  { %369 = vrot.lane.b32.xlu2 %v1807_v29, %s1628_s14 }
 0x2b0   :  { %298 = vrot.lane.b32.xlu1 %v293_v32, %s1639_s26 }
 0x2b8   :  { %396 = vrot.lane.b32.xlu1 %v304_v16, %s1640_s27 }
 0x302   :  { %v337_v33 = vpop.xlane.xlu2 %336 }
 0x303   :  { %v341_v34 = vmax.f32 %v337_v33, 0.0 }
 0x305   :  { %v343_v36 = vsub.f32 %v332_v24, %v341_v34  ;;  %v355_v59 = vsub.f32 0.0, %v341_v34 }
 0x307   :  { %v345_v37 = vmul.f32 1.442695, %v343_v36  ;;  %v357_v60 = vmul.f32 1.442695, %v355_v59 }
 0x309   :  { %1381 = vpow2.f32 %v345_v37 }
 0x30a   :  { %v370_v38 = vpop.permute.xlu2 %369  ;;  %v340_v39 = vpop.xlane.xlu1 %339 }
 0x30b   :  { %v342_v40 = vmax.f32 %v340_v39, 0.0  ;;  %v376_v41 = vsel %vm374_vm10, %v370_v38, 0 }
 0x30c   :  { %385 = vmatpush.bf16.msra.mxu3 %v376_v41 }
 0x30d   :  { %v344_v42 = vsub.f32 %v333_v27, %v342_v40  ;;  %v356_v61 = vsub.f32 0.0, %v342_v40 }
 0x30f   :  { %v1382_v43 = vpop.eup %1381  ;;  %v347_v44 = vmul.f32 1.442695, %v344_v42  ;;  %v359_v62 = vmul.f32 1.442695, %v356_v61 }
 0x310   :  { %v349_v45 = vsel %vm334_vm9, %v1382_v43, 0.0 }
 0x311   :  { %1383 = vpow2.f32 %v347_v44  ;;  %350 = vadd.xlane.f32.xlu0 %v349_v45 }
 0x312   :  { %1385 = vpow2.f32 %v357_v60 }
 0x313   :  { %1387 = vpow2.f32 %v359_v62 }
 0x317   :  { %v1384_v46 = vpop.eup %1383 }
 0x318   :  { %v352_v47 = vsel %vm334_vm9, %v1384_v46, 0.0  ;;  %v1386_v1 = vpop.eup %1385 }
 0x319   :  { %353 = vadd.xlane.f32.xlu2 %v352_v47  ;;  %v1388_v4 = vpop.eup %1387 }
 0x322   :  { %v299_v48 = vpop.permute.xlu1 %298 }
 0x323   :  { %v303_v57 = vadd.f32 %v299_v48, %v281_v56 }
 0x325   :  { %393 = vrot.lane.b32.xlu0 %v310_v22, %s1639_s26  ;;  %v492_v58 = vpack.c.bf16 %v303_v57, %v303_v57 }
 0x327   :  { %v503_v14 = vsel %vm311_vm8, %v492_v58, 0 }
 0x32a   :  { %v397_v50 = vpop.permute.xlu1 %396 }
 0x32b   :  { %v402_v51 = vsel %vm311_vm8, %v397_v50, 0 }
 0x32c   :  { %411 = vmatpush.bf16.xpose.msrb.mxu3 %v402_v51 }
 0x331   :  { %495 = vrot.lane.b32.xlu2 %v277_v55, %s1640_s27 }
 0x339   :  { %581 = vrot.lane.b32.xlu2 %v492_v58, %s1640_s27 }
 0x384   :  { %v351_v63 = vpop.xlane.xlu0 %350 }
 0x385   :  { %v361_v3 = vadd.f32 %v1386_v1, %v351_v63 }
 0x387   :  { %1389 = vrcp.f32 %v361_v3 }
 0x38c   :  { %v354_v5 = vpop.xlane.xlu2 %353 }
 0x38d   :  { %v362_v6 = vadd.f32 %v1388_v4, %v354_v5  ;;  %v1390_v7 = vpop.eup %1389 }
 0x38e   :  { %v365_v11 = vmul.f32 %v1390_v7, %v1382_v43 }
 0x38f   :  { %1391 = vrcp.f32 %v362_v6 }
 0x394   :  { %v496_v8 = vpop.permute.xlu2 %495 }
 0x395   :  { %v1392_v9 = vpop.eup %1391  ;;  %v498_v10 = vpack.c.bf16 %v496_v8, %v277_v55 }
 0x396   :  { %v366_v12 = vmul.f32 %v1392_v9, %v1384_v46 }
 0x397   :  { %578 = vrot.lane.b32.xlu1 %v498_v10, %s1639_s26  ;;  %v394_v16 = vpop.permute.xlu0 %393 }
 0x398   :  { %v367_v13 = vpack.c.bf16 %v366_v12, %v365_v11 }
 0x39a   :  { %1179 = vmatmul.msk.bf16.vlgmr.msra.gmra.mxu3 %vm334_vm9, %v367_v13 }
 0x39b   :  { %512 = vmatpush.bf16.xpose.msra.mxu3 %v503_v14 }
 0x39c   :  { %v582_v15 = vpop.permute.xlu2 %581 }
 0x39d   :  { %v587_v17 = vsel %vm311_vm8, %v582_v15, 0 }
 0x3aa   :  { %1180 = vmatmul.msk.bf16.vlgmr.msrb.gmra.mxu3 %vm311_vm8, %v394_v16 }
 0x3ab   :  { %596 = vmatpush.bf16.xpose.msrb.mxu3 %v587_v17 }
 0x3ba   :  { %1182 = vmatmul.msk.bf16.vlgmr.msra.gmra.mxu3 %vm311_vm8, %v498_v10 }
 0x409   :  { %v579_v18 = vpop.permute.xlu1 %578 }
 0x40a   :  { %1184 = vmatmul.msk.bf16.vlgmr.msrb.gmra.mxu3 %vm311_vm8, %v579_v18 }
 0x41d   :  { %v1831_v19 = vpop.f32.mrf.mxu3 }
 0x425   :  { %v1833_v20 = vpop.f32.mrf.mxu3 }
 0x42d   :  { %v413_v21 = vpop.f32.mrf.mxu3 }
 0x42e   :  { %v418_v22 = vmul.f32 0.25, %v413_v21  ;;  %v493_v21 = vpack.c.bf16 %v1811_v31, %v1811_v31 }
 0x430   :  { %v420_v23 = vsel %vm334_vm9, %v418_v22, -inf }
 0x431   :  { %421 = vmax.xlane.f32.xlu2 %v420_v23 }
 0x435   :  { %v415_v24 = vpop.f32.mrf.mxu3 }
 0x436   :  { %v419_v25 = vmul.f32 0.25, %v415_v24 }
 0x438   :  { %v423_v26 = vsel %vm334_vm9, %v419_v25, -inf }
 0x439   :  { %424 = vmax.xlane.f32.xlu1 %v423_v26 }
 0x43d   :  { %v514_v27 = vpop.f32.mrf.mxu3 }
 0x43e   :  { %v519_v28 = vmul.f32 0.25, %v514_v27 }
 0x440   :  { %v521_v30 = vsel %vm334_vm9, %v519_v28, -inf }
 0x441   :  { %522 = vmax.xlane.f32.xlu1 %v521_v30 }
 0x445   :  { %v516_v32 = vpop.f32.mrf.mxu3 }
 0x446   :  { %v520_v40 = vmul.f32 0.25, %v516_v32 }
 0x448   :  { %v524_v41 = vsel %vm334_vm9, %v520_v40, -inf }
 0x48d   :  { %v598_v33 = vpop.f32.mrf.mxu3 }
 0x48e   :  { %v603_v34 = vmul.f32 0.25, %v598_v33 }
 0x490   :  { %v605_v36 = vsel %vm334_vm9, %v603_v34, -inf }
 0x491   :  { %606 = vmax.xlane.f32.xlu0 %v605_v36 }
 0x495   :  { %v600_v37 = vpop.f32.mrf.mxu3 }
 0x496   :  { %v604_v38 = vmul.f32 0.25, %v600_v37 }
 0x498   :  { %v608_v39 = vsel %vm334_vm9, %v604_v38, -inf }
 0x499   :  { %609 = vmax.xlane.f32.xlu2 %v608_v39 }
 0x4a1   :  { %525 = vmax.xlane.f32.xlu2 %v524_v41 }
 0x4a4   :  { %v422_v42 = vpop.xlane.xlu2 %421 }
 0x4a5   :  { %v426_v43 = vmax.f32 %v422_v42, 0.0 }
 0x4a7   :  { %v428_v44 = vsub.f32 %v418_v22, %v426_v43  ;;  %v440_v10 = vsub.f32 0.0, %v426_v43 }
 0x4a9   :  { %v430_v45 = vmul.f32 1.442695, %v428_v44  ;;  %v442_v14 = vmul.f32 1.442695, %v440_v10 }
 0x4ab   :  { %1393 = vpow2.f32 %v430_v45 }
 0x4ac   :  { %v425_v46 = vpop.xlane.xlu1 %424 }
 0x4ad   :  { %v427_v47 = vmax.f32 %v425_v46, 0.0 }
 0x4af   :  { %v429_v48 = vsub.f32 %v419_v25, %v427_v47  ;;  %v441_v15 = vsub.f32 0.0, %v427_v47 }
 0x4b1   :  { %v1841_v49 = vpop.eup %1393  ;;  %v432_v50 = vmul.f32 1.442695, %v429_v48  ;;  %v444_v18 = vmul.f32 1.442695, %v441_v15 }
 0x4b2   :  { %v434_v51 = vsel %vm334_vm9, %v1841_v49, 0.0 }
 0x4b3   :  { %1395 = vpow2.f32 %v432_v50  ;;  %435 = vadd.xlane.f32.xlu0 %v434_v51 }
 0x4b4   :  { %v1845_v52 = vpop.xlane.xlu1 %522 }
 0x4b5   :  { %v527_v53 = vmax.f32 %v1845_v52, 0.0 }
 0x4b7   :  { %v529_v54 = vsub.f32 %v519_v28, %v527_v53  ;;  %v541_v37 = vsub.f32 0.0, %v527_v53 }
 0x4b9   :  { %v1396_v55 = vpop.eup %1395  ;;  %v531_v56 = vmul.f32 1.442695, %v529_v54  ;;  %453 = vrot.lane.b32.xlu2 %v1807_v29, %s1641_s6 }
 0x4ba   :  { %v437_v57 = vsel %vm334_vm9, %v1396_v55, 0.0 }
 0x4bb   :  { %1397 = vpow2.f32 %v531_v56  ;;  %438 = vadd.xlane.f32.xlu1 %v437_v57 }
 0x4c1   :  { %v1851_v58 = vpop.eup %1397 }
 0x4c2   :  { %v535_v59 = vsel %vm334_vm9, %v1851_v58, 0.0 }
 0x4c3   :  { %536 = vadd.xlane.f32.xlu0 %v535_v59 }
 0x504   :  { %v607_v60 = vpop.xlane.xlu0 %606 }
 0x505   :  { %v611_v61 = vmax.f32 %v607_v60, 0.0 }
 0x507   :  { %v613_v62 = vsub.f32 %v603_v34, %v611_v61  ;;  %v625_v41 = vsub.f32 0.0, %v611_v61 }
 0x509   :  { %v615_v63 = vmul.f32 1.442695, %v613_v62  ;;  %v627_v43 = vmul.f32 1.442695, %v625_v41 }
 0x50b   :  { %1399 = vpow2.f32 %v615_v63 }
 0x50c   :  { %v610_v1 = vpop.xlane.xlu2 %609 }
 0x50d   :  { %v612_v5 = vmax.f32 %v610_v1, 0.0 }
 0x50f   :  { %v614_v8 = vsub.f32 %v604_v38, %v612_v5  ;;  %v543_v38 = vmul.f32 1.442695, %v541_v37  ;;  %v626_v44 = vsub.f32 0.0, %v612_v5 }
 0x511   :  { %v1855_v3 = vpop.eup %1399  ;;  %v617_v12 = vmul.f32 1.442695, %v614_v8  ;;  %v629_v48 = vmul.f32 1.442695, %v626_v44 }
 0x512   :  { %v619_v29 = vsel %vm334_vm9, %v1855_v3, 0.0 }
 0x513   :  { %620 = vadd.xlane.f32.xlu0 %v619_v29 }
 0x514   :  { %v526_v4 = vpop.xlane.xlu2 %525 }
 0x515   :  { %v528_v6 = vmax.f32 %v526_v4, 0.0 }
 0x517   :  { %v530_v7 = vsub.f32 %v520_v40, %v528_v6  ;;  %v542_v39 = vsub.f32 0.0, %v528_v6 }
 0x519   :  { %v533_v9 = vmul.f32 1.442695, %v530_v7  ;;  %v545_v42 = vmul.f32 1.442695, %v542_v39 }
 0x51b   :  { %1401 = vpow2.f32 %v533_v9 }
 0x51c   :  { %v454_v11 = vpop.permute.xlu2 %453  ;;  %1403 = vpow2.f32 %v617_v12 }
 0x51d   :  { %v459_v13 = vsel %vm374_vm10, %v454_v11, 0  ;;  %1405 = vpow2.f32 %v442_v14 }
 0x51e   :  { %468 = vmatpush.bf16.msrb.mxu2 %v459_v13  ;;  %1407 = vpow2.f32 %v444_v18  ;;  %v1317_v18 = vld [vmem:[#allocation5 + $0x10] sm:$0xff] }
 0x521   :  { %v1402_v16 = vpop.eup %1401 }
 0x522   :  { %v538_v17 = vsel %vm334_vm9, %v1402_v16, 0.0  ;;  %v1404_v22 = vpop.eup %1403 }
 0x523   :  { %539 = vadd.xlane.f32.xlu1 %v538_v17  ;;  %v1406_v24 = vpop.eup %1405  ;;  %v622_v25 = vsel %vm334_vm9, %v1404_v22, 0.0  ;;  %v1318_v17 = vld [vmem:[#allocation5 + $0x18] sm:$0xff] }
 0x524   :  { %v1408_v27 = vpop.eup %1407  ;;  %715 = vmatpush.bf16.msrb.mxu0 %v1318_v17 }
 0x526   :  { %v436_v23 = vpop.xlane.xlu0 %435 }
 0x527   :  { %638 = vrot.lane.b32.xlu0 %v493_v21, %s1641_s6  ;;  %v446_v26 = vadd.f32 %v1406_v24, %v436_v23 }
 0x528   :  { %716 = vmatpush.bf16.msrb.mxu0 %v1317_v18 }
 0x529   :  { %1409 = vrcp.f32 %v446_v26 }
 0x52b   :  { %623 = vadd.xlane.f32.xlu1 %v622_v25 }
 0x52e   :  { %v439_v28 = vpop.xlane.xlu1 %438 }
 0x52f   :  { %v447_v30 = vadd.f32 %v1408_v27, %v439_v28  ;;  %v1410_v32 = vpop.eup %1409 }
 0x530   :  { %v450_v34 = vmul.f32 %v1410_v32, %v1841_v49 }
 0x531   :  { %1411 = vrcp.f32 %v447_v30 }
 0x532   :  { %1413 = vpow2.f32 %v543_v38 }
 0x533   :  { %1415 = vpow2.f32 %v545_v42 }
 0x534   :  { %1417 = vpow2.f32 %v627_v43 }
 0x536   :  { %v537_v40 = vpop.xlane.xlu0 %536 }
 0x537   :  { %v1412_v33 = vpop.eup %1411 }
 0x538   :  { %v451_v31 = vmul.f32 %v1412_v33, %v1396_v55  ;;  %v1414_v46 = vpop.eup %1413 }
 0x539   :  { %v547_v47 = vadd.f32 %v1414_v46, %v537_v40  ;;  %v1416_v49 = vpop.eup %1415 }
 0x53a   :  { %v452_v36 = vpack.c.bf16 %v451_v31, %v450_v34  ;;  %v1418_v53 = vpop.eup %1417 }
 0x53b   :  { %1419 = vrcp.f32 %v547_v47  ;;  %v1329_v47 = vld [vmem:[%s2098_s3 + $0x50] sm:$0xf0] }
 0x53c   :  { %1181 = vmatmul.msk.bf16.vlgmr.msrb.gmra.mxu2 %vm334_vm9, %v452_v36  ;;  %1421 = vpow2.f32 %v629_v48  ;;  %v1328_v48 = vld [vmem:[%s2098_s3 + $0x4c] sm:$0xf] }
 0x541   :  { %v1420_v56 = vpop.eup %1419 }
 0x542   :  { %v1422_v57 = vpop.eup %1421  ;;  %v551_v62 = vmul.f32 %v1420_v56, %v1851_v58  ;;  %v1325_v56 = vld [vmem:[%s2098_s3 + $0x34] sm:$0xf] }
 0x544   :  { %555 = vrot.lane.b32.xlu1 %v493_v21, %s1628_s14  ;;  %v1316_v21 = vld [vmem:[#allocation5 + $0x8] sm:$0xff] }
 0x545   :  { %717 = vmatpush.bf16.msrb.mxu0 %v1316_v21 }
 0x586   :  { %v621_v45 = vpop.xlane.xlu0 %620 }
 0x587   :  { %v631_v55 = vadd.f32 %v1418_v53, %v621_v45 }
 0x596   :  { %v540_v50 = vpop.xlane.xlu1 %539 }
 0x597   :  { %v548_v51 = vadd.f32 %v1416_v49, %v540_v50  ;;  %v1243_v49 = vld [vmem:[%s2098_s3 + $0x54] sm:$0xf0]  ;;  %v1249_v50 = vld [vmem:[%s2098_s3 + $0x50] sm:$0xf] }
 0x599   :  { %1423 = vrcp.f32 %v548_v51  ;;  %v639_v52 = vpop.permute.xlu0 %638  ;;  %v1330_v51 = vld [vmem:[%s2098_s3 + $0x58] sm:$0xf0] }
 0x59a   :  { %v644_v54 = vsel %vm374_vm10, %v639_v52, 0  ;;  %1425 = vrcp.f32 %v631_v55  ;;  %v1246_v52 = vor.u32 %v1328_v48, %v1243_v49  ;;  %v1250_v53 = vor.u32 %v1330_v51, %v1249_v50  ;;  %v1326_v55 = vld [vmem:[%s2098_s3 + $0x38] sm:$0xf0]  ;;  %v1336_v49 = vld [vmem:[%s2099_s4 + $0x28] sm:$0xff] }
 0x59b   :  { %653 = vmatpush.bf16.msra.mxu2 %v644_v54  ;;  %v1229_v54 = vld [vmem:[%s2098_s3 + $0x30] sm:$0xf] }
 0x59c   :  { %863 = vmatpush.bf16.msra.mxu3 %v1246_v52 }
 0x59e   :  { %v624_v59 = vpop.xlane.xlu1 %623 }
 0x59f   :  { %v1424_v60 = vpop.eup %1423  ;;  %v632_v61 = vadd.f32 %v1422_v57, %v624_v59  ;;  %877 = vmatpush.bf16.msrb.mxu2 %v1250_v53  ;;  %v1230_v57 = vor.u32 %v1326_v55, %v1229_v54  ;;  %v1231_v59 = vld [vmem:[%s2098_s3 + $0x3c] sm:$0xf0] }
 0x5a0   :  { %v552_v63 = vmul.f32 %v1424_v60, %v1402_v16  ;;  %v1426_v29 = vpop.eup %1425  ;;  %v1237_v60 = vld [vmem:[%s2098_s3 + $0x38] sm:$0xf]  ;;  %v1335_v55 = vld [vmem:[%s2099_s4 + $0x20] sm:$0xff] }
 0x5a1   :  { %1427 = vrcp.f32 %v632_v61  ;;  %v635_v5 = vmul.f32 %v1426_v29, %v1855_v3  ;;  %v1327_v61 = vld [vmem:[%s2098_s3 + $0x40] sm:$0xf0] }
 0x5a2   :  { %v553_v1 = vpack.c.bf16 %v552_v63, %v551_v62  ;;  %v1234_v62 = vor.u32 %v1325_v56, %v1231_v59  ;;  %v1238_v63 = vor.u32 %v1327_v61, %v1237_v60  ;;  %v1323_v29 = vld [vmem:[%s2098_s3 + $0x20] sm:$0xf0]  ;;  %v1342_v56 = vld [vmem:[%s2099_s4 + $0x58] sm:$0xff]  ;;  %v1341_v61 = vld [vmem:[%s2099_s4 + $0x50] sm:$0xff] }
 0x5a4   :  { %864 = vmatpush.bf16.msra.mxu3 %v1234_v62  ;;  %878 = vmatpush.bf16.msrb.mxu2 %v1238_v63  ;;  %v1333_v62 = vld [vmem:[%s2099_s4 + $0x10] sm:$0xff] }
 0x5a7   :  { %v1428_v4 = vpop.eup %1427 }
 0x5a8   :  { %v636_v6 = vmul.f32 %v1428_v4, %v1404_v22  ;;  %v1315_v22 = vld [vmem:[#allocation5] sm:$0xff]  ;;  %v1322_v4 = vld [vmem:[%s2098_s3 + $0x1c] sm:$0xf] }
 0x5a9   :  { %718 = vmatpush.bf16.msrb.mxu0 %v1315_v22 }
 0x5aa   :  { %v637_v7 = vpack.c.bf16 %v636_v6, %v635_v5  ;;  %v1219_v6 = vld [vmem:[%s2098_s3 + $0x24] sm:$0xf0] }
 0x5ac   :  { %1185 = vmatmul.msk.bf16.vlgmr.msra.gmra.mxu2 %vm334_vm9, %v637_v7  ;;  %v1225_v7 = vld [vmem:[%s2098_s3 + $0x20] sm:$0xf] }
 0x5b6   :  { %v556_v8 = vpop.permute.xlu1 %555 }
 0x5b7   :  { %v561_v9 = vsel %vm374_vm10, %v556_v8, 0  ;;  %v1324_v8 = vld [vmem:[%s2098_s3 + $0x28] sm:$0xf0] }
 0x5b8   :  { %570 = vmatpush.bf16.msrb.mxu1 %v561_v9  ;;  %v1222_v9 = vor.u32 %v1322_v4, %v1219_v6  ;;  %v1340_v4 = vld [vmem:[%s2099_s4 + $0x48] sm:$0xff] }
 0x5ba   :  { %865 = vmatpush.bf16.msra.mxu3 %v1222_v9  ;;  %v1339_v9 = vld [vmem:[%s2099_s4 + $0x40] sm:$0xff] }
 0x5bb   :  { %1183 = vmatmul.msk.bf16.vlgmr.msrb.gmra.mxu1 %vm334_vm9, %v553_v1  ;;  %v1217_v1 = vld [vmem:[%s2098_s3 + $0x18] sm:$0xf] }
 0x5bc   :  { %v1218_v5 = vor.u32 %v1323_v29, %v1217_v1 }
 0x5bf   :  { %v470_v10 = vpop.f32.mrf.mxu2 }
 0x5c7   :  { %v472_v11 = vpop.f32.mrf.mxu2 }
 0x62f   :  { %v655_v58 = vpop.f32.mrf.mxu2 }
 0x630   :  { %v1365_v16 = vpack.i.bf16 %v655_v58, %v470_v10  ;;  %v1226_v10 = vor.u32 %v1324_v8, %v1225_v7  ;;  %v1320_v58 = vld [vmem:[%s2098_s3 + $0x8] sm:$0xf0] }
 0x631   :  { %v1332_v7 = vld [vmem:[%s2099_s4 + $0x8] sm:$0xff] }
 0x632   :  { %879 = vmatpush.bf16.msrb.mxu2 %v1226_v10  ;;  %v1331_v10 = vld [vmem:[%s2099_s4] sm:$0xff] }
 0x637   :  { %v657_v12 = vpop.f32.mrf.mxu2 }
 0x638   :  { %v1370_v13 = vpack.i.bf16 %v657_v12, %v472_v11  ;;  %v572_v14 = vpop.f32.mrf.mxu1  ;;  %v1205_v11 = vld [vmem:[%s2098_s3] sm:$0xf]  ;;  %v1319_v12 = vld [vmem:[%s2098_s3 + $0x4] sm:$0xf] }
 0x63a   :  { %1371 = vrot.lane.b32.xlu0 %v1370_v13, %s1641_s6  ;;  %v1206_v13 = vor.u32 %v1320_v58, %v1205_v11 }
 0x640   :  { %v574_v15 = vpop.f32.mrf.mxu1 }
 0x641   :  { %v1360_v3 = vpack.i.bf16 %v574_v15, %v1833_v20  ;;  %v1213_v15 = vld [vmem:[%s2098_s3 + $0x8] sm:$0xf] }
 0x643   :  { %1361 = vrot.lane.b32.xlu2 %v1360_v3, %s1642_s28  ;;  %v1321_v3 = vld [vmem:[%s2098_s3 + $0x10] sm:$0xf0] }
 0x644   :  { %v1214_v18 = vor.u32 %v1321_v3, %v1213_v15 }
 0x646   :  { %880 = vmatpush.bf16.msrb.mxu2 %v1214_v18 }
 0x64b   :  { %1366 = vrot.lane.b32.xlu2 %v1365_v16, %s1638_s1 }
 0x69d   :  { %v1362_v23 = vpop.permute.xlu2 %1361 }
 0x69e   :  { %v1364_v25 = vunpack.i.h.bf16 %v1362_v23  ;;  %v1363_v26 = vunpack.i.l.bf16 %v1362_v23 }
 0x6a0   :  { %v672_v30 = vsel %vm311_vm8, %v572_v14, %v1364_v25  ;;  %v487_v32 = vsel %vm311_vm8, %v1831_v19, %v1363_v26  ;;  %v1207_v14 = vld [vmem:[%s2098_s3 + $0xc] sm:$0xf0] }
 0x6a1   :  { %v1210_v17 = vor.u32 %v1319_v12, %v1207_v14 }
 0x6a3   :  { %866 = vmatpush.bf16.msra.mxu3 %v1210_v17 }
 0x6a5   :  { %v1367_v24 = vpop.permute.xlu2 %1366 }
 0x6a6   :  { %v1369_v27 = vunpack.i.h.bf16 %v1367_v24  ;;  %v1368_v28 = vunpack.i.l.bf16 %v1367_v24 }
 0x6a8   :  { %v489_v31 = vsel %vm488_vm11, %v487_v32, %v1368_v28  ;;  %v673_v36 = vsel %vm488_vm11, %v672_v30, %v1369_v27 }
 0x6ac   :  { %v1372_v20 = vpop.permute.xlu0 %1371 }
 0x6ad   :  { %v1374_v33 = vunpack.i.h.bf16 %v1372_v20  ;;  %v1373_v34 = vunpack.i.l.bf16 %v1372_v20 }
 0x6af   :  { %v491_v37 = vsel %vm490_vm12, %v489_v31, %v1373_v34  ;;  %v674_v38 = vsel %vm490_vm12, %v673_v36, %v1374_v33 }
 0x6b0   :  { %v675_v39 = vpack.c.bf16 %v674_v38, %v491_v37 }
 0x6b2   :  { %1202 = vmatmul.msk.bf16.vlgmr.msrb.gmra.mxu0 %vm132_vm0, %v675_v39 }
 0x72f   :  { %v720_v40 = vpop.f32.mrf.mxu0 }
 0x730   :  { %v1882_v41 = vadd.f32 %v720_v40, %v1729_v0  ;;  %v1241_v0 = vld [vmem:[%s2098_s3 + $0x48] sm:$0xf]  ;;  %s1128_s3 = sshll.u32 %s2104_s9, 4  ;;  %s1129_s3 = int_to_ptr.hbm [resolvable:$true] %s1128_s3 }
 0x732   :  { %v727_v42 = vmul.f32 %v1882_v41, %v1882_v41 }
 0x734   :  { %v729_v43 = vsel %vm132_vm0, %v727_v42, 0.0 }
 0x735   :  { %730 = vadd.xlane.f32.xlu2 %v729_v43 }
 0x737   :  { %v722_v19 = vpop.f32.mrf.mxu0 }
 0x738   :  { %v1888_v44 = vadd.f32 %v722_v19, %v1733_v2  ;;  %v1242_v2 = vor.u32 %v1329_v47, %v1241_v0 }
 0x73a   :  { %v728_v45 = vmul.f32 %v1888_v44, %v1888_v44  ;;  %849 = vmatpush.bf16.msra.mxu1 %v1242_v2  ;;  %v1337_v2 = vld [vmem:[%s2099_s4 + $0x30] sm:$0xff] }
 0x73c   :  { %v732_v46 = vsel %vm132_vm0, %v728_v45, 0.0  ;;  %v1338_v45 = vld [vmem:[%s2099_s4 + $0x38] sm:$0xff] }
 0x73d   :  { %733 = vadd.xlane.f32.xlu1 %v732_v46  ;;  %1090 = vmatpush.bf16.msra.mxu0 %v1338_v45 }
 0x73e   :  { %850 = vmatpush.bf16.msra.mxu1 %v1230_v57  ;;  %v1334_v57 = vld [vmem:[%s2099_s4 + $0x18] sm:$0xff]  ;;  %s1643_s4 = smov [#allocation13]  }
 0x73f   :  { %s1126_s1 = sshll.u32 %s1643_s4, 4  ;;  %s1127_s1 = int_to_ptr.vmem [resolvable:$true] %s1126_s1 }
 0x741   :  { %1091 = vmatpush.bf16.msra.mxu0 %v1337_v2 }
 0x742   :  { %851 = vmatpush.bf16.msra.mxu1 %v1218_v5 }
 0x745   :  { %1092 = vmatpush.bf16.msra.mxu0 %v1336_v49 }
 0x746   :  { %852 = vmatpush.bf16.msra.mxu1 %v1206_v13 }
 0x749   :  { %1093 = vmatpush.bf16.msra.mxu0 %v1335_v55 }
 0x74a   :  { %1108 = vmatpush.bf16.msrb.mxu1 %v1342_v56 }
 0x74d   :  { %1094 = vmatpush.bf16.msra.mxu0 %v1334_v57 }
 0x74e   :  { %1109 = vmatpush.bf16.msrb.mxu1 %v1341_v61 }
 0x751   :  { %1095 = vmatpush.bf16.msra.mxu0 %v1333_v62 }
 0x752   :  { %1110 = vmatpush.bf16.msrb.mxu1 %v1340_v4 }
 0x755   :  { %1096 = vmatpush.bf16.msra.mxu0 %v1332_v7 }
 0x756   :  { %1111 = vmatpush.bf16.msrb.mxu1 %v1339_v9 }
 0x759   :  { %1097 = vmatpush.bf16.msra.mxu0 %v1331_v10 }
 0x7a8   :  { %v731_v16 = vpop.xlane.xlu2 %730 }
 0x7a9   :  { %v735_v21 = vmul.f32 %v731_v16, %v1787_v35 }
 0x7ab   :  { %v737_v22 = vadd.f32 1e-06, %v735_v21 }
 0x7ad   :  { %1429 = vrsqrt.f32 %v737_v22  ;;  %vm745_vm14 = vweird.f32 %v737_v22 }
 0x7b0   :  { %v734_v23 = vpop.xlane.xlu1 %733 }
 0x7b1   :  { %v736_v24 = vmul.f32 %v734_v23, %v1787_v35 }
 0x7b3   :  { %v1430_v25 = vpop.eup %1429  ;;  %v738_v26 = vadd.f32 1e-06, %v736_v24 }
 0x7b4   :  { %v740_v27 = vmul.f32 %v1430_v25, %v737_v22  ;;  %vm746_vm13 = vweird.f32 %v1430_v25 }
 0x7b5   :  { %1431 = vrsqrt.f32 %v738_v26  ;;  %vm747_vm1 = vmor %vm745_vm14, %vm746_vm13  ;;  %vm755_vm2 = vweird.f32 %v738_v26 }
 0x7b6   :  { %v741_v28 = vmul.f32 %v1430_v25, %v740_v27 }
 0x7b8   :  { %v742_v20 = vmul.f32 0.5, %v741_v28 }
 0x7ba   :  { %v743_v32 = vsub.f32 1.5, %v742_v20 }
 0x7bb   :  { %v1432_v30 = vpop.eup %1431 }
 0x7bc   :  { %v750_v33 = vmul.f32 %v1432_v30, %v738_v26  ;;  %v744_v31 = vmul.f32 %v1430_v25, %v743_v32  ;;  %vm756_vm15 = vweird.f32 %v1432_v30 }
 0x7bd   :  { %vm757_vm3 = vmor %vm755_vm2, %vm756_vm15 }
 0x7be   :  { %v751_v34 = vmul.f32 %v1432_v30, %v750_v33  ;;  %v748_v38 = vsel %vm747_vm1, %v1430_v25, %v744_v31 }
 0x7bf   :  { %v759_v40 = vmul.f32 %v748_v38, %v1882_v41 }
 0x7c0   :  { %v752_v36 = vmul.f32 0.5, %v751_v34 }
 0x7c2   :  { %v753_v37 = vsub.f32 1.5, %v752_v36 }
 0x7c4   :  { %v754_v39 = vmul.f32 %v1432_v30, %v753_v37 }
 0x7c6   :  { %v758_v35 = vsel %vm757_vm3, %v1432_v30, %v754_v39 }
 0x7c7   :  { %v760_v42 = vmul.f32 %v758_v35, %v1888_v44 }
 0x7c9   :  { %v761_v43 = vpack.c.bf16 %v760_v42, %v759_v40 }
 0x7cb   :  { %1251 = vmatmul.msk.bf16.vlgmr.msra.gmra.mxu1 %vm132_vm0, %v761_v43  ;;  %1252 = vmatmul.msk.bf16.vlgmr.msra.gmra.mxu3 %vm132_vm0, %v761_v43 }
 0x7cc   :  { %1253 = vmatmul.msk.bf16.vlgmr.msrb.gmra.mxu2 %vm132_vm0, %v761_v43 }
 0x848   :  { %v1985_v48 = vpop.f32.mrf.mxu1 }
 0x849   :  { %v1254_v50 = vmul.f32 -1.442695, %v1985_v48 }
 0x84b   :  { %1433 = vpow2.f32 %v1254_v50 }
 0x84e   :  { %v1972_v19 = vpop.f32.mrf.mxu3 }
 0x84f   :  { %971 = vrot.lane.b32.xlu0 %v1972_v19, %s1628_s14  ;;  %v882_v46 = vpop.f32.mrf.mxu2  ;;  %v1255_v52 = vmul.f32 -1.442695, %v1972_v19 }
 0x850   :  { %v1994_v51 = vpop.f32.mrf.mxu1 }
 0x851   :  { %v1256_v54 = vmul.f32 -1.442695, %v1994_v51  ;;  %1435 = vpow2.f32 %v1255_v52  ;;  %v1434_v59 = vpop.eup %1433 }
 0x852   :  { %v2014_v29 = vadd.f32 1.0, %v1434_v59 }
 0x854   :  { %vm908_vm5 = vweird.f32 %v2014_v29  ;;  %v914_v20 = vand.u32 2147483648, %v2014_v29  ;;  %v912_v42 = vand.u32 2147483647, %v2014_v29 }
 0x856   :  { %v1980_v0 = vpop.f32.mrf.mxu3  ;;  %v915_v55 = vor.u32 1.1754944e-38, %v914_v20  ;;  %vm913_vm3 = vcmp.eq.f32.partialorder %v912_v42, 8.507059e+37 }
 0x857   :  { %973 = vrot.lane.b32.xlu0 %v882_v46, %s1628_s14  ;;  %v884_v47 = vpop.f32.mrf.mxu2  ;;  %v1257_v53 = vmul.f32 -1.442695, %v1980_v0  ;;  %v1436_v60 = vpop.eup %1435 }
 0x858   :  { %v2019_v5 = vadd.f32 1.0, %v1436_v60 }
 0x859   :  { %1437 = vpow2.f32 %v1257_v53 }
 0x85a   :  { %1439 = vpow2.f32 %v1256_v54  ;;  %vm923_vm6 = vweird.f32 %v2019_v5  ;;  %v929_v32 = vand.u32 2147483648, %v2019_v5  ;;  %v927_v39 = vand.u32 2147483647, %v2019_v5 }
 0x85b   :  { %1441 = vrcp.f32 %v2014_v29 }
 0x85c   :  { %1443 = vrcp.f32 %v2019_v5  ;;  %v930_v52 = vor.u32 1.1754944e-38, %v929_v32  ;;  %vm928_vm1 = vcmp.eq.f32.partialorder %v927_v39, 8.507059e+37 }
 0x85f   :  { %975 = vrot.lane.b32.xlu0 %v1980_v0, %s1628_s14  ;;  %v1438_v63 = vpop.eup %1437 }
 0x860   :  { %v1440_v1 = vpop.eup %1439  ;;  %v2021_v6 = vadd.f32 1.0, %v1438_v63 }
 0x861   :  { %v2026_v8 = vadd.f32 1.0, %v1440_v1  ;;  %v1442_v11 = vpop.eup %1441 }
 0x862   :  { %1445 = vrcp.f32 %v2021_v6  ;;  %v1444_v58 = vpop.eup %1443  ;;  %v904_v16 = vmul.f32 %v1442_v11, %v2014_v29  ;;  %vm909_vm4 = vweird.f32 %v1442_v11  ;;  %v959_v37 = vand.u32 2147483648, %v2021_v6 }
 0x863   :  { %1447 = vrcp.f32 %v2026_v8  ;;  %v919_v15 = vmul.f32 %v1444_v58, %v2019_v5  ;;  %vm924_vm7 = vweird.f32 %v1444_v58  ;;  %vm2046_vm9 = vmor %vm908_vm5, %vm909_vm4  ;;  %v944_v35 = vand.u32 2147483648, %v2026_v8 }
 0x864   :  { %v905_v22 = vsub.f32 1.0, %v904_v16  ;;  %vm2051_vm11 = vmor %vm923_vm6, %vm924_vm7  ;;  %vm953_vm12 = vweird.f32 %v2021_v6  ;;  %v957_v40 = vand.u32 2147483647, %v2021_v6  ;;  %vm938_vm13 = vweird.f32 %v2026_v8 }
 0x865   :  { %v920_v18 = vsub.f32 1.0, %v919_v15  ;;  %v942_v43 = vand.u32 2147483647, %v2026_v8  ;;  %v960_v54 = vor.u32 1.1754944e-38, %v959_v37  ;;  %v945_v56 = vor.u32 1.1754944e-38, %v944_v35 }
 0x866   :  { %v906_v27 = vmul.f32 %v1442_v11, %v905_v22  ;;  %vm958_vm2 = vcmp.eq.f32.partialorder %v957_v40, 8.507059e+37 }
 0x867   :  { %977 = vrot.lane.b32.xlu0 %v884_v47, %s1628_s14  ;;  %v921_v25 = vmul.f32 %v1444_v58, %v920_v18  ;;  %vm943_vm4 = vcmp.eq.f32.partialorder %v942_v43, 8.507059e+37 }
 0x868   :  { %v1446_v12 = vpop.eup %1445  ;;  %v907_v34 = vadd.f32 %v1442_v11, %v906_v27 }
 0x869   :  { %v1448_v13 = vpop.eup %1447  ;;  %v949_v3 = vmul.f32 %v1446_v12, %v2021_v6  ;;  %v922_v30 = vadd.f32 %v1444_v58, %v921_v25  ;;  %vm954_vm8 = vweird.f32 %v1446_v12 }
 0x86a   :  { %v934_v17 = vmul.f32 %v1448_v13, %v2026_v8  ;;  %vm939_vm10 = vweird.f32 %v1448_v13  ;;  %vm2062_vm14 = vmor %vm953_vm12, %vm954_vm8  ;;  %v911_v50 = vsel %vm2046_vm9, %v1442_v11, %v907_v34 }
 0x86b   :  { %v950_v21 = vsub.f32 1.0, %v949_v3  ;;  %v926_v47 = vsel %vm2051_vm11, %v1444_v58, %v922_v30  ;;  %vm2068_vm15 = vmor %vm938_vm13, %vm939_vm10  ;;  %v916_v60 = vsel %vm913_vm3, %v915_v55, %v911_v50 }
 0x86c   :  { %v935_v23 = vsub.f32 1.0, %v934_v17  ;;  %v931_v57 = vsel %vm928_vm1, %v930_v52, %v926_v47  ;;  %v963_v29 = vmul.f32 %v916_v60, %v1985_v48 }
 0x86d   :  { %v951_v26 = vmul.f32 %v1446_v12, %v950_v21  ;;  %v964_v62 = vmul.f32 %v931_v57, %v1972_v19 }
 0x86e   :  { %v936_v28 = vmul.f32 %v1448_v13, %v935_v23 }
 0x86f   :  { %v952_v33 = vadd.f32 %v1446_v12, %v951_v26 }
 0x870   :  { %v937_v36 = vadd.f32 %v1448_v13, %v936_v28 }
 0x871   :  { %v956_v49 = vsel %vm2062_vm14, %v1446_v12, %v952_v33 }
 0x872   :  { %v941_v53 = vsel %vm2068_vm15, %v1448_v13, %v937_v36  ;;  %v961_v59 = vsel %vm958_vm2, %v960_v54, %v956_v49 }
 0x873   :  { %v946_v61 = vsel %vm943_vm4, %v945_v56, %v941_v53  ;;  %v966_v63 = vmul.f32 %v961_v59, %v1980_v0 }
 0x874   :  { %v965_v4 = vmul.f32 %v946_v61, %v1994_v51 }
 0x8c1   :  { %v972_v14 = vpop.permute.xlu0 %971 }
 0x8c9   :  { %v974_v24 = vpop.permute.xlu0 %973 }
 0x8ca   :  { %v979_v1 = vsel %vm132_vm0, %v972_v14, %v974_v24  ;;  %v986_v6 = vmul.f32 %v974_v24, %v964_v62 }
 0x8cb   :  { %v985_v9 = vmul.f32 %v979_v1, %v963_v29 }
 0x8d1   :  { %v976_v46 = vpop.permute.xlu0 %975 }
 0x8d9   :  { %v978_v5 = vpop.permute.xlu0 %977 }
 0x8da   :  { %v980_v7 = vsel %vm132_vm0, %v976_v46, %v978_v5  ;;  %v988_v8 = vmul.f32 %v978_v5, %v966_v63 }
 0x8db   :  { %v987_v10 = vmul.f32 %v980_v7, %v965_v4 }
 0x8dc   :  { %v990_v11 = vpack.c.bf16 %v988_v8, %v986_v6 }
 0x8dd   :  { %v989_v58 = vpack.c.bf16 %v987_v10, %v985_v9 }
 0x8de   :  { %1306 = vmatmul.msk.bf16.vlgmr.msrb.gmra.mxu1 %vm132_vm0, %v990_v11 }
 0x8df   :  { %1098 = vmatmul.bf16.vlgmr.msra.gmra.mxu0 %v989_v58 }
 0x95b   :  { %v1113_v19 = vpop.f32.mrf.mxu1 }
 0x95c   :  { %v1099_v0 = vpop.f32.mrf.mxu0 }
 0x95d   :  { %v1114_v12 = vadd.f32 %v1113_v19, %v1099_v0 }
 0x95f   :  { %v1118_v13 = vadd.f32 %v1114_v12, %v1882_v41 }
 0x961   :  { %1120 = vst.msk [vmem:[#allocation13] sm:$0xff] %vm132_vm0, %v1118_v13 }
 0x963   :  { %v1115_v48 = vpop.f32.mrf.mxu1 }
 0x964   :  { %v1101_v51 = vpop.f32.mrf.mxu0 }
 0x965   :  { %v1116_v14 = vadd.f32 %v1115_v48, %v1101_v51 }
 0x967   :  { %v1119_v15 = vadd.f32 %v1116_v14, %v1888_v44 }
 0x969   :  { %1121 = vst.msk [vmem:[#allocation13 + $0x8] sm:$0xff] %vm132_vm0, %v1119_v15 }
 0x96a   :  { %1134 = dma.vmem_to_hbm [thread:$0]  %s1127_s1, 256, %s1129_s3, [#allocation4], %s1631_s23, %s1631_s23, %s1632_s24  }
 0x96b   :  { %1625 = dma.done.wait [#allocation4], 256  }
 0x96c   :  { %1626 = vsyncadd [#allocation4], 4294967040 }
 0x96d   :  { %1139 = vsyncpa [#allocation3], 1 }
 0x96e   :  { %1140 = vsyncpa [#allocation6], 1 }
 0x96f   :  { %1141 = vsyncpa [#allocation9], 1 }
 0x970   :  { %1142 = vsyncpa [#allocation12], 1 }
 0x971   :  { %1143 = vsyncpa [#allocation4], 1 }

</bundles_post_ra>
